<compile_context>
chip_gen: v6e
topology: v6e:2x2x1
jax: 0.10.0
libtpu: 0.0.40
codegen_flags: <defaults>
</compile_context>

<pallas_src>
import functools

import jax
import jax.numpy as jnp
from jax.experimental import pallas as pl
from jax.experimental.pallas import tpu as pltpu

NEG_INF = -1e30
LANE = 128


# ----------------------------------------------------------------------------
# Fused HANLayer + head kernel: one grid step == one node type
# ----------------------------------------------------------------------------
def _make_fused_kernel(M, Npad, DP, Dout):
    def kernel(adj_ref, h_ref, w_ref, a_ref, sw1_ref, sb1_ref, sw2t_ref,
               rs_ref, hw_ref, hb_ref, g_ref, bt_ref, out_ref):
        f32 = jnp.float32

        # ---- 1) feature projection for ALL metapaths in one MXU op --------
        # W is lane-padded so every per-metapath slice is a full 128-lane tile.
        h = h_ref[...]                                      # (Npad, Din)
        feat_all = jnp.dot(h, w_ref[...],
                           preferred_element_type=f32)      # (Npad, M*DP)

        # ---- 2) all attention logits in one MXU op (block-diag a_stack) ---
        # col 2m   = a_r . feat_m  (destination term)
        # col 2m+1 = a_l . feat_m  (source term)
        logits = jnp.dot(feat_all, a_ref[...],
                         preferred_element_type=f32)        # (Npad, 2M)

        z_list = []
        for m in range(M):                                  # static unroll
            feat_m = feat_all[:, m * DP:(m + 1) * DP]       # full-tile slice
            er = logits[:, 2 * m:2 * m + 1]                 # (Npad, 1) dst
            el = logits[:, 2 * m + 1:2 * m + 2]             # (Npad, 1) src
            e = er + jnp.transpose(el)                      # (Npad, Npad)
            e = jnp.maximum(e, 0.2 * e)                     # leaky_relu
            e = e + adj_ref[m]                              # additive mask
            e_max = jnp.max(e, axis=-1, keepdims=True)
            p = jnp.exp(e - e_max)                          # masked -> exact 0
            alpha = p / jnp.sum(p, axis=-1, keepdims=True)  # edge softmax
            out_m = jnp.dot(alpha, feat_m,
                            preferred_element_type=f32)     # (Npad, DP)
            # ELU (alpha=1), overflow-safe in the discarded branch.
            z_list.append(jnp.where(out_m > 0, out_m,
                                    jnp.exp(jnp.minimum(out_m, 0.0)) - 1.0))

        # ---- 3) semantic attention over metapaths (batched over M*Npad) ---
        z_cat = jnp.concatenate(z_list, axis=0)             # (M*Npad, DP)
        proj = jnp.tanh(jnp.dot(z_cat, sw1_ref[...],
                                preferred_element_type=f32) + sb1_ref[...])
        # (H,1) projection as VPU multiply + lane reduce (no 1-lane MXU pass).
        wm = jnp.sum(proj * sw2t_ref[...], axis=-1, keepdims=True)  # (M*Npad,1)

        rs = rs_ref[...]                     # (Npad,1): 1/N_real on real rows
        scores = [jnp.sum(wm[m * Npad:(m + 1) * Npad, :] * rs, keepdims=True)
                  for m in range(M)]                         # (1,1) each
        smax = scores[0]
        for s in scores[1:]:
            smax = jnp.maximum(smax, s)
        exps = [jnp.exp(s - smax) for s in scores]
        total = exps[0]
        for ex in exps[1:]:
            total = total + ex
        h2 = (exps[0] / total) * z_list[0]
        for m in range(1, M):
            h2 = h2 + (exps[m] / total) * z_list[m]          # (Npad, DP)

        # ---- 4) Linear (+bias) -> ReLU -> LayerNorm head -------------------
        y = jnp.dot(h2, hw_ref[...], preferred_element_type=f32) + hb_ref[...]
        y = jnp.maximum(y, 0.0)
        mean = jnp.mean(y, axis=-1, keepdims=True)
        var = jnp.mean((y - mean) ** 2, axis=-1, keepdims=True)
        out_ref[...] = ((y - mean) * jax.lax.rsqrt(var + 1e-5)
                        * g_ref[...] + bt_ref[...])

    return kernel


def fused_mhgan_call(adj_bias, h, w_stk, a_stk, sw1, sb1, sw2t, rs,
                     hw, hb, ln_g, ln_b):
    """Single gridded call over node types (grid=(2,), megacore-parallel)."""
    T, M, Npad, _ = adj_bias.shape
    Din = h.shape[-1]
    DP = w_stk.shape[-1] // M
    H = sw1.shape[-1]
    Dout = hw.shape[-1]

    t3 = lambda t: (t, 0, 0)
    t4 = lambda t: (t, 0, 0, 0)
    shared = lambda t: (0, 0)

    return pl.pallas_call(
        _make_fused_kernel(M, Npad, DP, Dout),
        out_shape=jax.ShapeDtypeStruct((T, Npad, Dout), jnp.float32),
        grid=(T,),
        in_specs=[
            pl.BlockSpec((None, M, Npad, Npad), t4),     # additive adj bias
            pl.BlockSpec((None, Npad, Din), t3),         # node features
            pl.BlockSpec((None, Din, M * DP), t3),       # stacked GAT weights
            pl.BlockSpec((None, M * DP, 2 * M), t3),     # block-diag attn vecs
            pl.BlockSpec((None, DP, H), t3),             # semantic W1 (padded)
            pl.BlockSpec((None, 1, H), t3),              # semantic b1
            pl.BlockSpec((None, 1, H), t3),              # semantic W2^T
            pl.BlockSpec((None, Npad, 1), t3),           # row scale (1/N real)
            pl.BlockSpec((None, DP, Dout), t3),          # head W (padded rows)
            pl.BlockSpec((None, 1, Dout), t3),           # head bias
            pl.BlockSpec((1, Dout), shared),             # LN gamma (shared)
            pl.BlockSpec((1, Dout), shared),             # LN beta  (shared)
        ],
        out_specs=pl.BlockSpec((None, Npad, Dout), t3),
        compiler_params=pltpu.CompilerParams(
            dimension_semantics=("parallel",)),
    )(adj_bias, h, w_stk, a_stk, sw1, sb1, sw2t, rs, hw, hb, ln_g, ln_b)


# ----------------------------------------------------------------------------
# Host-side packing: pad to Npad / 128-lane tiles and stack node types
# ----------------------------------------------------------------------------
def _pack_node_type(adj, h, hp, head_W, head_b, Npad, DP):
    M, N, _ = adj.shape
    Din = h.shape[1]
    Dout = hp["gat_W"].shape[-1]

    # Adjacency -> additive mask; padded rows get a self loop so their
    # softmax stays finite (their outputs are discarded by the wrapper).
    a = jnp.zeros((M, Npad, Npad), jnp.float32).at[:, :N, :N].set(adj)
    a = jnp.maximum(a, jnp.eye(Npad, dtype=jnp.float32)[None])
    adj_bias = jnp.where(a > 0, 0.0, NEG_INF).astype(jnp.float32)

    h_pad = jnp.zeros((Npad, Din), jnp.float32).at[:N].set(h)

    # Per-metapath GAT weights, each padded to a full 128-lane tile, stacked.
    w = jnp.pad(hp["gat_W"], ((0, 0), (0, 0), (0, DP - Dout)))   # (M,Din,DP)
    w_stk = jnp.transpose(w, (1, 0, 2)).reshape(Din, M * DP)

    # Block-diagonal attention-vector matrix: one MXU matmul gives all logits.
    a_stk = jnp.zeros((M * DP, 2 * M), jnp.float32)
    for m in range(M):
        a_stk = a_stk.at[m * DP:m * DP + Dout, 2 * m].set(hp["attn_r"][m, 0])
        a_stk = a_stk.at[m * DP:m * DP + Dout, 2 * m + 1].set(hp["attn_l"][m, 0])

    sw1 = jnp.pad(hp["sem_W1"], ((0, DP - Dout), (0, 0)))        # (DP, H)
    sw2t = jnp.transpose(hp["sem_W2"])                           # (1, H)

    rs = (jnp.arange(Npad) < N).astype(jnp.float32)[:, None] / float(N)

    hw = jnp.pad(head_W, ((0, DP - Dout), (0, 0)))               # (DP, Dout)

    return (adj_bias, h_pad, w_stk, a_stk, sw1, hp["sem_b1"], sw2t, rs,
            hw, head_b)


# ----------------------------------------------------------------------------
# MHGAN forward (Pallas-backed)
# ----------------------------------------------------------------------------
def mhgan_forward(params, adjs, user_idx, item_idx, neg_item_idx):
    n_user = params["feature"]["user"].shape[0]
    n_item = params["feature"]["item"].shape[0]
    Npad = max(n_user, n_item)
    Dout = params["han"]["user"]["gat_W"].shape[-1]
    DP = ((Dout + LANE - 1) // LANE) * LANE

    packs = []
    for key, hW, hb in (("user", params["user_W"], params["user_b"]),
                        ("item", params["item_W"], params["item_b"])):
        packs.append(_pack_node_type(adjs[key], params["feature"][key],
                                     params["han"][key], hW, hb, Npad, DP))
    stacked = [jnp.stack(xs, axis=0) for xs in zip(*packs)]

    out = fused_mhgan_call(*stacked, params["ln_g"], params["ln_b"])
    user_emb = out[0, :n_user]
    item_emb = out[1, :n_item]
    return user_emb[user_idx], item_emb[item_idx], item_emb[neg_item_idx]


# ----------------------------------------------------------------------------
# Deterministic parameter / graph construction
# ----------------------------------------------------------------------------
def xavier_uniform(key, shape):
    fan_in, fan_out = shape[-2], shape[-1]
    bound = (6.0 / (fan_in + fan_out)) ** 0.5
    return jax.random.uniform(key, shape, jnp.float32, -bound, bound)


def make_params(key, n_user, n_item, in_size, out_size, num_heads,
                sem_hidden, n_metapaths):
    assert num_heads == 1, "forward math requires out_size*num_heads == out_size"
    D = out_size * num_heads
    keys = iter(jax.random.split(key, 64))

    def han_params():
        return {
            "gat_W": xavier_uniform(next(keys), (n_metapaths, in_size, D)),
            "attn_l": xavier_uniform(next(keys), (n_metapaths, 1, D)),
            "attn_r": xavier_uniform(next(keys), (n_metapaths, 1, D)),
            "sem_W1": xavier_uniform(next(keys), (D, sem_hidden)),
            "sem_b1": jnp.zeros((1, sem_hidden), jnp.float32),
            "sem_W2": xavier_uniform(next(keys), (sem_hidden, 1)),
        }

    params = {
        "feature": {
            "user": xavier_uniform(next(keys), (n_user, in_size)),
            "item": xavier_uniform(next(keys), (n_item, in_size)),
        },
        "han": {"user": han_params(), "item": han_params()},
        "user_W": xavier_uniform(next(keys), (out_size, out_size)),
        "user_b": jnp.zeros((1, out_size), jnp.float32),
        "item_W": xavier_uniform(next(keys), (out_size, out_size)),
        "item_b": jnp.zeros((1, out_size), jnp.float32),
        "ln_g": jnp.ones((1, out_size), jnp.float32),
        "ln_b": jnp.zeros((1, out_size), jnp.float32),
    }
    return params


def make_adjacency(key, n_metapaths, n_nodes, p=0.15):
    a = (jax.random.uniform(key, (n_metapaths, n_nodes, n_nodes)) < p).astype(jnp.float32)
    eye = jnp.eye(n_nodes, dtype=jnp.float32)[None]
    return jnp.clip(a + eye, 0.0, 1.0)


if __name__ == "__main__":
    N_USER, N_ITEM = 32, 48
    IN_SIZE, OUT_SIZE, NUM_HEADS = 16, 32, 1
    SEM_HIDDEN = 128
    N_METAPATHS = 2
    BATCH = 8

    root = jax.random.PRNGKey(0)
    k_params, k_adj_u, k_adj_i, k_u, k_i, k_n = jax.random.split(root, 6)

    params = make_params(k_params, N_USER, N_ITEM, IN_SIZE, OUT_SIZE,
                         NUM_HEADS, SEM_HIDDEN, N_METAPATHS)
    adjs = {
        "user": make_adjacency(k_adj_u, N_METAPATHS, N_USER),
        "item": make_adjacency(k_adj_i, N_METAPATHS, N_ITEM),
    }

    user_idx = jax.random.randint(k_u, (BATCH,), 0, N_USER)
    item_idx = jax.random.randint(k_i, (BATCH,), 0, N_ITEM)
    neg_item_idx = jax.random.randint(k_n, (BATCH,), 0, N_ITEM)

    fwd = jax.jit(functools.partial(mhgan_forward, params, adjs))
    user_feat, item_feat, neg_item_feat = fwd(user_idx, item_idx, neg_item_idx)
    jax.block_until_ready((user_feat, item_feat, neg_item_feat))

    assert user_feat.shape == (BATCH, OUT_SIZE)
    assert item_feat.shape == (BATCH, OUT_SIZE)
    assert neg_item_feat.shape == (BATCH, OUT_SIZE)
    assert jnp.all(jnp.isfinite(user_feat)) and jnp.all(jnp.isfinite(item_feat))
    assert jnp.all(jnp.isfinite(neg_item_feat))
    print("KERNEL_OK")
</pallas_src>

<mosaic_0001>
module attributes {stable_mosaic.version = 11 : i64} {
  func.func @kernel(%arg0: i32, %arg1: memref<1x2x48x48xf32, #tpu.memory_space<vmem>>, %arg2: memref<1x48x16xf32, #tpu.memory_space<vmem>>, %arg3: memref<1x16x256xf32, #tpu.memory_space<vmem>>, %arg4: memref<1x256x4xf32, #tpu.memory_space<vmem>>, %arg5: memref<1x128x128xf32, #tpu.memory_space<vmem>>, %arg6: memref<1x1x128xf32, #tpu.memory_space<vmem>>, %arg7: memref<1x1x128xf32, #tpu.memory_space<vmem>>, %arg8: memref<1x48x1xf32, #tpu.memory_space<vmem>>, %arg9: memref<1x128x32xf32, #tpu.memory_space<vmem>>, %arg10: memref<1x1x32xf32, #tpu.memory_space<vmem>>, %arg11: memref<1x32xf32, #tpu.memory_space<vmem>>, %arg12: memref<1x32xf32, #tpu.memory_space<vmem>>, %arg13: memref<1x48x32xf32, #tpu.memory_space<vmem>>) attributes {dimension_semantics = [#tpu.dimension_semantics<parallel>], iteration_bounds = array<i64: 2>, scalar_prefetch = 0 : i64, scratch_operands = 0 : i64, tpu.core_type = #tpu.core_type<tc>, window_params = [{transform_indices = @transform_0, window_bounds = array<i64: 1, 2, 48, 48>}, {transform_indices = @transform_1, window_bounds = array<i64: 1, 48, 16>}, {transform_indices = @transform_2, window_bounds = array<i64: 1, 16, 256>}, {transform_indices = @transform_3, window_bounds = array<i64: 1, 256, 4>}, {transform_indices = @transform_4, window_bounds = array<i64: 1, 128, 128>}, {transform_indices = @transform_5, window_bounds = array<i64: 1, 1, 128>}, {transform_indices = @transform_6, window_bounds = array<i64: 1, 1, 128>}, {transform_indices = @transform_7, window_bounds = array<i64: 1, 48, 1>}, {transform_indices = @transform_8, window_bounds = array<i64: 1, 128, 32>}, {transform_indices = @transform_9, window_bounds = array<i64: 1, 1, 32>}, {pipeline_mode = #tpu.pipeline_mode<synchronous>, transform_indices = @transform_10, window_bounds = array<i64: 1, 32>}, {pipeline_mode = #tpu.pipeline_mode<synchronous>, transform_indices = @transform_11, window_bounds = array<i64: 1, 32>}, {transform_indices = @transform_12, window_bounds = array<i64: 1, 48, 32>}]} {
    %c0 = arith.constant 0 : index
    %c0_0 = arith.constant 0 : index
    %c0_1 = arith.constant 0 : index
    %0 = vector.load %arg2[%c0, %c0_0, %c0_1] : memref<1x48x16xf32, #tpu.memory_space<vmem>>, vector<1x48x16xf32>
    %1 = vector.shape_cast %0 : vector<1x48x16xf32> to vector<48x16xf32>
    %c0_2 = arith.constant 0 : index
    %c0_3 = arith.constant 0 : index
    %c0_4 = arith.constant 0 : index
    %2 = vector.load %arg3[%c0_2, %c0_3, %c0_4] : memref<1x16x256xf32, #tpu.memory_space<vmem>>, vector<1x16x256xf32>
    %3 = vector.shape_cast %2 : vector<1x16x256xf32> to vector<16x256xf32>
    %cst = arith.constant dense<0.000000e+00> : vector<48x256xf32>
    %4 = tpu.matmul %1, %3, %cst {dimension_numbers = #tpu.dot_dimension_numbers<[1], [0], [0], [1], [0, 0, 1, 1], [], []>} : vector<48x16xf32>, vector<16x256xf32>, vector<48x256xf32> -> vector<48x256xf32>
    %c0_5 = arith.constant 0 : index
    %c0_6 = arith.constant 0 : index
    %c0_7 = arith.constant 0 : index
    %5 = vector.load %arg4[%c0_5, %c0_6, %c0_7] : memref<1x256x4xf32, #tpu.memory_space<vmem>>, vector<1x256x4xf32>
    %6 = vector.shape_cast %5 : vector<1x256x4xf32> to vector<256x4xf32>
    %cst_8 = arith.constant dense<0.000000e+00> : vector<48x4xf32>
    %7 = tpu.matmul %4, %6, %cst_8 {dimension_numbers = #tpu.dot_dimension_numbers<[1], [0], [0], [1], [0, 0, 1, 1], [], []>} : vector<48x256xf32>, vector<256x4xf32>, vector<48x4xf32> -> vector<48x4xf32>
    %8 = vector.extract_strided_slice %4 {offsets = [0, 0], sizes = [48, 128], strides = [1, 1]} : vector<48x256xf32> to vector<48x128xf32>
    %9 = vector.extract_strided_slice %7 {offsets = [0, 0], sizes = [48, 1], strides = [1, 1]} : vector<48x4xf32> to vector<48x1xf32>
    %10 = vector.extract_strided_slice %7 {offsets = [0, 1], sizes = [48, 1], strides = [1, 1]} : vector<48x4xf32> to vector<48x1xf32>
    %11 = tpu.transpose %10, [1, 0] : vector<48x1xf32> -> vector<1x48xf32>
    %12 = vector.broadcast %9 : vector<48x1xf32> to vector<48x48xf32>
    %13 = vector.broadcast %11 : vector<1x48xf32> to vector<48x48xf32>
    %14 = arith.addf %12, %13 : vector<48x48xf32>
    %cst_9 = arith.constant 2.000000e-01 : f32
    %15 = vector.broadcast %cst_9 : f32 to vector<48x48xf32>
    %16 = arith.mulf %15, %14 : vector<48x48xf32>
    %17 = arith.maximumf %14, %16 : vector<48x48xf32>
    %c0_10 = arith.constant 0 : index
    %c0_11 = arith.constant 0 : index
    %c0_12 = arith.constant 0 : index
    %c0_13 = arith.constant 0 : index
    %18 = vector.load %arg1[%c0_10, %c0_11, %c0_12, %c0_13] : memref<1x2x48x48xf32, #tpu.memory_space<vmem>>, vector<1x1x48x48xf32>
    %19 = vector.shape_cast %18 : vector<1x1x48x48xf32> to vector<48x48xf32>
    %20 = arith.addf %17, %19 : vector<48x48xf32>
    %cst_14 = arith.constant dense<0xFF800000> : vector<48xf32>
    %21 = vector.multi_reduction <maximumf>, %20, %cst_14 [1] : vector<48x48xf32> to vector<48xf32>
    %22 = vector.shape_cast %21 : vector<48xf32> to vector<48x1xf32>
    %23 = vector.broadcast %22 : vector<48x1xf32> to vector<48x48xf32>
    %24 = arith.subf %20, %23 : vector<48x48xf32>
    %25 = math.exp %24 : vector<48x48xf32>
    %cst_15 = arith.constant dense<0.000000e+00> : vector<48xf32>
    %26 = vector.multi_reduction <add>, %25, %cst_15 [1] : vector<48x48xf32> to vector<48xf32>
    %27 = vector.shape_cast %26 : vector<48xf32> to vector<48x1xf32>
    %28 = vector.broadcast %27 : vector<48x1xf32> to vector<48x48xf32>
    %29 = arith.divf %25, %28 : vector<48x48xf32>
    %cst_16 = arith.constant dense<0.000000e+00> : vector<48x128xf32>
    %30 = tpu.matmul %29, %8, %cst_16 {dimension_numbers = #tpu.dot_dimension_numbers<[1], [0], [0], [1], [0, 0, 1, 1], [], []>} : vector<48x48xf32>, vector<48x128xf32>, vector<48x128xf32> -> vector<48x128xf32>
    %cst_17 = arith.constant 0.000000e+00 : f32
    %31 = vector.broadcast %cst_17 : f32 to vector<48x128xf32>
    %32 = arith.cmpf ogt, %30, %31 : vector<48x128xf32>
    %cst_18 = arith.constant 0.000000e+00 : f32
    %33 = vector.broadcast %cst_18 : f32 to vector<48x128xf32>
    %34 = arith.minimumf %30, %33 : vector<48x128xf32>
    %35 = math.exp %34 : vector<48x128xf32>
    %cst_19 = arith.constant 1.000000e+00 : f32
    %36 = vector.broadcast %cst_19 : f32 to vector<48x128xf32>
    %37 = arith.subf %35, %36 : vector<48x128xf32>
    %38 = arith.select %32, %30, %37 : vector<48x128xi1>, vector<48x128xf32>
    %39 = vector.extract_strided_slice %4 {offsets = [0, 128], sizes = [48, 128], strides = [1, 1]} : vector<48x256xf32> to vector<48x128xf32>
    %40 = vector.extract_strided_slice %7 {offsets = [0, 2], sizes = [48, 1], strides = [1, 1]} : vector<48x4xf32> to vector<48x1xf32>
    %41 = vector.extract_strided_slice %7 {offsets = [0, 3], sizes = [48, 1], strides = [1, 1]} : vector<48x4xf32> to vector<48x1xf32>
    %42 = tpu.transpose %41, [1, 0] : vector<48x1xf32> -> vector<1x48xf32>
    %43 = vector.broadcast %40 : vector<48x1xf32> to vector<48x48xf32>
    %44 = vector.broadcast %42 : vector<1x48xf32> to vector<48x48xf32>
    %45 = arith.addf %43, %44 : vector<48x48xf32>
    %cst_20 = arith.constant 2.000000e-01 : f32
    %46 = vector.broadcast %cst_20 : f32 to vector<48x48xf32>
    %47 = arith.mulf %46, %45 : vector<48x48xf32>
    %48 = arith.maximumf %45, %47 : vector<48x48xf32>
    %c0_21 = arith.constant 0 : index
    %c1 = arith.constant 1 : index
    %c0_22 = arith.constant 0 : index
    %c0_23 = arith.constant 0 : index
    %49 = vector.load %arg1[%c0_21, %c1, %c0_22, %c0_23] : memref<1x2x48x48xf32, #tpu.memory_space<vmem>>, vector<1x1x48x48xf32>
    %50 = vector.shape_cast %49 : vector<1x1x48x48xf32> to vector<48x48xf32>
    %51 = arith.addf %48, %50 : vector<48x48xf32>
    %cst_24 = arith.constant dense<0xFF800000> : vector<48xf32>
    %52 = vector.multi_reduction <maximumf>, %51, %cst_24 [1] : vector<48x48xf32> to vector<48xf32>
    %53 = vector.shape_cast %52 : vector<48xf32> to vector<48x1xf32>
    %54 = vector.broadcast %53 : vector<48x1xf32> to vector<48x48xf32>
    %55 = arith.subf %51, %54 : vector<48x48xf32>
    %56 = math.exp %55 : vector<48x48xf32>
    %cst_25 = arith.constant dense<0.000000e+00> : vector<48xf32>
    %57 = vector.multi_reduction <add>, %56, %cst_25 [1] : vector<48x48xf32> to vector<48xf32>
    %58 = vector.shape_cast %57 : vector<48xf32> to vector<48x1xf32>
    %59 = vector.broadcast %58 : vector<48x1xf32> to vector<48x48xf32>
    %60 = arith.divf %56, %59 : vector<48x48xf32>
    %cst_26 = arith.constant dense<0.000000e+00> : vector<48x128xf32>
    %61 = tpu.matmul %60, %39, %cst_26 {dimension_numbers = #tpu.dot_dimension_numbers<[1], [0], [0], [1], [0, 0, 1, 1], [], []>} : vector<48x48xf32>, vector<48x128xf32>, vector<48x128xf32> -> vector<48x128xf32>
    %cst_27 = arith.constant 0.000000e+00 : f32
    %62 = vector.broadcast %cst_27 : f32 to vector<48x128xf32>
    %63 = arith.cmpf ogt, %61, %62 : vector<48x128xf32>
    %cst_28 = arith.constant 0.000000e+00 : f32
    %64 = vector.broadcast %cst_28 : f32 to vector<48x128xf32>
    %65 = arith.minimumf %61, %64 : vector<48x128xf32>
    %66 = math.exp %65 : vector<48x128xf32>
    %cst_29 = arith.constant 1.000000e+00 : f32
    %67 = vector.broadcast %cst_29 : f32 to vector<48x128xf32>
    %68 = arith.subf %66, %67 : vector<48x128xf32>
    %69 = arith.select %63, %61, %68 : vector<48x128xi1>, vector<48x128xf32>
    %70 = tpu.concatenate %38, %69 in 0 : vector<48x128xf32>, vector<48x128xf32> -> vector<96x128xf32>
    %c0_30 = arith.constant 0 : index
    %c0_31 = arith.constant 0 : index
    %c0_32 = arith.constant 0 : index
    %71 = vector.load %arg5[%c0_30, %c0_31, %c0_32] : memref<1x128x128xf32, #tpu.memory_space<vmem>>, vector<1x128x128xf32>
    %72 = vector.shape_cast %71 : vector<1x128x128xf32> to vector<128x128xf32>
    %cst_33 = arith.constant dense<0.000000e+00> : vector<96x128xf32>
    %73 = tpu.matmul %70, %72, %cst_33 {dimension_numbers = #tpu.dot_dimension_numbers<[1], [0], [0], [1], [0, 0, 1, 1], [], []>} : vector<96x128xf32>, vector<128x128xf32>, vector<96x128xf32> -> vector<96x128xf32>
    %c0_34 = arith.constant 0 : index
    %c0_35 = arith.constant 0 : index
    %c0_36 = arith.constant 0 : index
    %74 = vector.load %arg6[%c0_34, %c0_35, %c0_36] : memref<1x1x128xf32, #tpu.memory_space<vmem>>, vector<1x1x128xf32>
    %75 = vector.shape_cast %74 : vector<1x1x128xf32> to vector<1x128xf32>
    %76 = vector.broadcast %75 : vector<1x128xf32> to vector<96x128xf32>
    %77 = arith.addf %73, %76 : vector<96x128xf32>
    %78 = math.tanh %77 : vector<96x128xf32>
    %c0_37 = arith.constant 0 : index
    %c0_38 = arith.constant 0 : index
    %c0_39 = arith.constant 0 : index
    %79 = vector.load %arg7[%c0_37, %c0_38, %c0_39] : memref<1x1x128xf32, #tpu.memory_space<vmem>>, vector<1x1x128xf32>
    %80 = vector.shape_cast %79 : vector<1x1x128xf32> to vector<1x128xf32>
    %81 = vector.broadcast %80 : vector<1x128xf32> to vector<96x128xf32>
    %82 = arith.mulf %78, %81 : vector<96x128xf32>
    %cst_40 = arith.constant dense<0.000000e+00> : vector<96xf32>
    %83 = vector.multi_reduction <add>, %82, %cst_40 [1] : vector<96x128xf32> to vector<96xf32>
    %84 = vector.shape_cast %83 : vector<96xf32> to vector<96x1xf32>
    %c0_41 = arith.constant 0 : index
    %c0_42 = arith.constant 0 : index
    %c0_43 = arith.constant 0 : index
    %85 = vector.load %arg8[%c0_41, %c0_42, %c0_43] : memref<1x48x1xf32, #tpu.memory_space<vmem>>, vector<1x48x1xf32>
    %86 = vector.shape_cast %85 : vector<1x48x1xf32> to vector<48x1xf32>
    %87 = vector.extract_strided_slice %84 {offsets = [0, 0], sizes = [48, 1], strides = [1, 1]} : vector<96x1xf32> to vector<48x1xf32>
    %88 = arith.mulf %87, %86 : vector<48x1xf32>
    %89 = vector.shape_cast %88 : vector<48x1xf32> to vector<1x48x1xf32>
    %cst_44 = arith.constant dense<0.000000e+00> : vector<1xf32>
    %90 = vector.multi_reduction <add>, %89, %cst_44 [1, 2] : vector<1x48x1xf32> to vector<1xf32>
    %91 = vector.shape_cast %90 : vector<1xf32> to vector<1x1x1xf32>
    %92 = vector.extract %91[0, 0, 0] : f32 from vector<1x1x1xf32>
    %93 = vector.broadcast %92 : f32 to vector<1x1xf32>
    %94 = vector.extract_strided_slice %84 {offsets = [48, 0], sizes = [48, 1], strides = [1, 1]} : vector<96x1xf32> to vector<48x1xf32>
    %95 = arith.mulf %94, %86 : vector<48x1xf32>
    %96 = vector.shape_cast %95 : vector<48x1xf32> to vector<1x48x1xf32>
    %cst_45 = arith.constant dense<0.000000e+00> : vector<1xf32>
    %97 = vector.multi_reduction <add>, %96, %cst_45 [1, 2] : vector<1x48x1xf32> to vector<1xf32>
    %98 = vector.shape_cast %97 : vector<1xf32> to vector<1x1x1xf32>
    %99 = vector.extract %98[0, 0, 0] : f32 from vector<1x1x1xf32>
    %100 = vector.broadcast %99 : f32 to vector<1x1xf32>
    %101 = arith.maximumf %93, %100 : vector<1x1xf32>
    %102 = arith.subf %93, %101 : vector<1x1xf32>
    %103 = math.exp %102 : vector<1x1xf32>
    %104 = arith.subf %100, %101 : vector<1x1xf32>
    %105 = math.exp %104 : vector<1x1xf32>
    %106 = arith.addf %103, %105 : vector<1x1xf32>
    %107 = arith.divf %103, %106 : vector<1x1xf32>
    %108 = vector.broadcast %107 : vector<1x1xf32> to vector<48x128xf32>
    %109 = arith.mulf %108, %38 : vector<48x128xf32>
    %110 = arith.divf %105, %106 : vector<1x1xf32>
    %111 = vector.broadcast %110 : vector<1x1xf32> to vector<48x128xf32>
    %112 = arith.mulf %111, %69 : vector<48x128xf32>
    %113 = arith.addf %109, %112 : vector<48x128xf32>
    %c0_46 = arith.constant 0 : index
    %c0_47 = arith.constant 0 : index
    %c0_48 = arith.constant 0 : index
    %114 = vector.load %arg9[%c0_46, %c0_47, %c0_48] : memref<1x128x32xf32, #tpu.memory_space<vmem>>, vector<1x128x32xf32>
    %115 = vector.shape_cast %114 : vector<1x128x32xf32> to vector<128x32xf32>
    %cst_49 = arith.constant dense<0.000000e+00> : vector<48x32xf32>
    %116 = tpu.matmul %113, %115, %cst_49 {dimension_numbers = #tpu.dot_dimension_numbers<[1], [0], [0], [1], [0, 0, 1, 1], [], []>} : vector<48x128xf32>, vector<128x32xf32>, vector<48x32xf32> -> vector<48x32xf32>
    %c0_50 = arith.constant 0 : index
    %c0_51 = arith.constant 0 : index
    %c0_52 = arith.constant 0 : index
    %117 = vector.load %arg10[%c0_50, %c0_51, %c0_52] : memref<1x1x32xf32, #tpu.memory_space<vmem>>, vector<1x1x32xf32>
    %118 = vector.shape_cast %117 : vector<1x1x32xf32> to vector<1x32xf32>
    %119 = vector.broadcast %118 : vector<1x32xf32> to vector<48x32xf32>
    %120 = arith.addf %116, %119 : vector<48x32xf32>
    %cst_53 = arith.constant 0.000000e+00 : f32
    %121 = vector.broadcast %cst_53 : f32 to vector<48x32xf32>
    %122 = arith.maximumf %120, %121 : vector<48x32xf32>
    %cst_54 = arith.constant dense<0.000000e+00> : vector<48xf32>
    %123 = vector.multi_reduction <add>, %122, %cst_54 [1] : vector<48x32xf32> to vector<48xf32>
    %124 = vector.shape_cast %123 : vector<48xf32> to vector<48x1xf32>
    %cst_55 = arith.constant 3.200000e+01 : f32
    %125 = vector.broadcast %cst_55 : f32 to vector<48x1xf32>
    %126 = arith.divf %124, %125 : vector<48x1xf32>
    %127 = vector.broadcast %126 : vector<48x1xf32> to vector<48x32xf32>
    %128 = arith.subf %122, %127 : vector<48x32xf32>
    %129 = arith.mulf %128, %128 : vector<48x32xf32>
    %cst_56 = arith.constant dense<0.000000e+00> : vector<48xf32>
    %130 = vector.multi_reduction <add>, %129, %cst_56 [1] : vector<48x32xf32> to vector<48xf32>
    %131 = vector.shape_cast %130 : vector<48xf32> to vector<48x1xf32>
    %cst_57 = arith.constant 3.200000e+01 : f32
    %132 = vector.broadcast %cst_57 : f32 to vector<48x1xf32>
    %133 = arith.divf %131, %132 : vector<48x1xf32>
    %134 = vector.broadcast %126 : vector<48x1xf32> to vector<48x32xf32>
    %135 = arith.subf %122, %134 : vector<48x32xf32>
    %cst_58 = arith.constant 9.99999974E-6 : f32
    %136 = vector.broadcast %cst_58 : f32 to vector<48x1xf32>
    %137 = arith.addf %133, %136 : vector<48x1xf32>
    %138 = math.rsqrt %137 : vector<48x1xf32>
    %139 = vector.broadcast %138 : vector<48x1xf32> to vector<48x32xf32>
    %140 = arith.mulf %135, %139 : vector<48x32xf32>
    %c0_59 = arith.constant 0 : index
    %c0_60 = arith.constant 0 : index
    %141 = vector.load %arg11[%c0_59, %c0_60] : memref<1x32xf32, #tpu.memory_space<vmem>>, vector<1x32xf32>
    %142 = vector.broadcast %141 : vector<1x32xf32> to vector<48x32xf32>
    %143 = arith.mulf %140, %142 : vector<48x32xf32>
    %c0_61 = arith.constant 0 : index
    %c0_62 = arith.constant 0 : index
    %144 = vector.load %arg12[%c0_61, %c0_62] : memref<1x32xf32, #tpu.memory_space<vmem>>, vector<1x32xf32>
    %145 = vector.broadcast %144 : vector<1x32xf32> to vector<48x32xf32>
    %146 = arith.addf %143, %145 : vector<48x32xf32>
    %c0_63 = arith.constant 0 : index
    %c0_64 = arith.constant 0 : index
    %c0_65 = arith.constant 0 : index
    %147 = vector.load %arg13[%c0_63, %c0_64, %c0_65] : memref<1x48x32xf32, #tpu.memory_space<vmem>>, vector<1x48x32xf32>
    %148 = vector.shape_cast %147 : vector<1x48x32xf32> to vector<48x32xf32>
    %149 = vector.shape_cast %146 : vector<48x32xf32> to vector<1x48x32xf32>
    tpu.vector_store %arg13[%c0_63, %c0_64, %c0_65], %149 {strides = array<i32>} : memref<1x48x32xf32, #tpu.memory_space<vmem>>, vector<1x48x32xf32>,
    return
  }
  func.func @transform_0(%arg0: i32) -> (i32, i32, i32, i32) {
    %c0_i32 = arith.constant 0 : i32
    %c0_i32_0 = arith.constant 0 : i32
    %c0_i32_1 = arith.constant 0 : i32
    %c0_i32_2 = arith.constant 0 : i32
    return %arg0, %c0_i32, %c0_i32_0, %c0_i32_1 : i32, i32, i32, i32
  }
  func.func @transform_1(%arg0: i32) -> (i32, i32, i32) {
    %c0_i32 = arith.constant 0 : i32
    %c0_i32_0 = arith.constant 0 : i32
    %c0_i32_1 = arith.constant 0 : i32
    return %arg0, %c0_i32, %c0_i32_0 : i32, i32, i32
  }
  func.func @transform_2(%arg0: i32) -> (i32, i32, i32) {
    %c0_i32 = arith.constant 0 : i32
    %c0_i32_0 = arith.constant 0 : i32
    %c0_i32_1 = arith.constant 0 : i32
    return %arg0, %c0_i32, %c0_i32_0 : i32, i32, i32
  }
  func.func @transform_3(%arg0: i32) -> (i32, i32, i32) {
    %c0_i32 = arith.constant 0 : i32
    %c0_i32_0 = arith.constant 0 : i32
    %c0_i32_1 = arith.constant 0 : i32
    return %arg0, %c0_i32, %c0_i32_0 : i32, i32, i32
  }
  func.func @transform_4(%arg0: i32) -> (i32, i32, i32) {
    %c0_i32 = arith.constant 0 : i32
    %c0_i32_0 = arith.constant 0 : i32
    %c0_i32_1 = arith.constant 0 : i32
    return %arg0, %c0_i32, %c0_i32_0 : i32, i32, i32
  }
  func.func @transform_5(%arg0: i32) -> (i32, i32, i32) {
    %c0_i32 = arith.constant 0 : i32
    %c0_i32_0 = arith.constant 0 : i32
    %c0_i32_1 = arith.constant 0 : i32
    return %arg0, %c0_i32, %c0_i32_0 : i32, i32, i32
  }
  func.func @transform_6(%arg0: i32) -> (i32, i32, i32) {
    %c0_i32 = arith.constant 0 : i32
    %c0_i32_0 = arith.constant 0 : i32
    %c0_i32_1 = arith.constant 0 : i32
    return %arg0, %c0_i32, %c0_i32_0 : i32, i32, i32
  }
  func.func @transform_7(%arg0: i32) -> (i32, i32, i32) {
    %c0_i32 = arith.constant 0 : i32
    %c0_i32_0 = arith.constant 0 : i32
    %c0_i32_1 = arith.constant 0 : i32
    return %arg0, %c0_i32, %c0_i32_0 : i32, i32, i32
  }
  func.func @transform_8(%arg0: i32) -> (i32, i32, i32) {
    %c0_i32 = arith.constant 0 : i32
    %c0_i32_0 = arith.constant 0 : i32
    %c0_i32_1 = arith.constant 0 : i32
    return %arg0, %c0_i32, %c0_i32_0 : i32, i32, i32
  }
  func.func @transform_9(%arg0: i32) -> (i32, i32, i32) {
    %c0_i32 = arith.constant 0 : i32
    %c0_i32_0 = arith.constant 0 : i32
    %c0_i32_1 = arith.constant 0 : i32
    return %arg0, %c0_i32, %c0_i32_0 : i32, i32, i32
  }
  func.func @transform_10(%arg0: i32) -> (i32, i32) {
    %c0_i32 = arith.constant 0 : i32
    %c0_i32_0 = arith.constant 0 : i32
    %c0_i32_1 = arith.constant 0 : i32
    return %c0_i32, %c0_i32_0 : i32, i32
  }
  func.func @transform_11(%arg0: i32) -> (i32, i32) {
    %c0_i32 = arith.constant 0 : i32
    %c0_i32_0 = arith.constant 0 : i32
    %c0_i32_1 = arith.constant 0 : i32
    return %c0_i32, %c0_i32_0 : i32, i32
  }
  func.func @transform_12(%arg0: i32) -> (i32, i32, i32) {
    %c0_i32 = arith.constant 0 : i32
    %c0_i32_0 = arith.constant 0 : i32
    %c0_i32_1 = arith.constant 0 : i32
    return %arg0, %c0_i32, %c0_i32_0 : i32, i32, i32
  }
}

</mosaic_0001>

<bundles_post_ra>
// kernel: mhgan_forward.1
= control target key start
LH: loop header
LB: loop body
LE: loop exit
PB: predicated region body
PF: predicated region fallthrough
CT: control target
= control target key end

     0   :  { %s2713_s21 = smov 0   ;;  %s3138_s0 = inlined_call_operand.vmem [shape: f32[2,2,48,48], index: 0, kind: input, shape index: {}]   ;;  %s3139_s1 = inlined_call_operand.vmem [shape: f32[2,48,16], index: 1, kind: input, shape index: {}]   ;;  %s3140_s2 = inlined_call_operand.vmem [shape: f32[2,16,256], index: 2, kind: input, shape index: {}]   ;;  %s3141_s3 = inlined_call_operand.vmem [shape: f32[2,256,4], index: 3, kind: input, shape index: {}]   ;;  %s3142_s4 = inlined_call_operand.vmem [shape: f32[2,128,128], index: 4, kind: input, shape index: {}]   ;;  %s3143_s5 = inlined_call_operand.vmem [shape: f32[2,1,128], index: 5, kind: input, shape index: {}]   ;;  %s3144_s6 = inlined_call_operand.vmem [shape: f32[2,1,128], index: 6, kind: input, shape index: {}]   ;;  %s3145_s7 = inlined_call_operand.vmem [shape: f32[2,48,1], index: 7, kind: input, shape index: {}]   ;;  %s3146_s8 = inlined_call_operand.vmem [shape: f32[2,128,32], index: 8, kind: input, shape index: {}]   ;;  %s3147_s9 = inlined_call_operand.vmem [shape: f32[2,1,32], index: 9, kind: input, shape index: {}]   ;;  %s3148_s10 = inlined_call_operand.vmem [shape: f32[1,32], index: 10, kind: input, shape index: {}]   ;;  %s3149_s11 = inlined_call_operand.vmem [shape: f32[1,32], index: 11, kind: input, shape index: {}]   ;;  %s3150_s12 = inlined_call_operand.vmem [shape: f32[2,48,32], index: 12, kind: output, shape index: {}]  }
   0x1 LB: > { %s2170_s22 = sadd.s32 4294967295, %s2641_s21   ;;  %p2174_p0 = scmp.ge.s32.totalorder %s2641_s21, 1  ;;  %s2641_s21 = sphi %s2713_s21, %s22_s21  }
   0x2   : > { %p446_p1 = scmp.lt.s32.totalorder %s2641_s21, 3 }
   0x4   : > { %p447_p2 = pnand %p2174_p0, %p446_p1 }
   0x5   : > { %p527_p3 = scmp.lt.s32.totalorder (!%p447_p2), %s2170_s22, 1  ;;  %s2646_s17 = smov (!%p447_p2), 127  }
   0x6   : > { %450 = sbr.rel (%p447_p2) target bundleno = 2371 (0x943), region = 68  ;;  %s2647_s18 = smov (!%p447_p2), 125  }
   0xb   : > { %v2643_v0 = vmov 0.0   ;;  %s3152_s22 = smov (!%p527_p3, %s2170_s22), 1  ;;  %vm586_vm0 = vcmask 130048   ;;  %v2644_v55 = vmov 2   ;;  %v2645_v56 = vmov 0  }
   0xc   : > { %669 = vmatprep.mubr.f32.mxu0 %v2643_v0  ;;  %s2230_s23 = sshll.u32 %s3152_s22, 5  ;;  %s2231_s24 = sshll.u32 %s3152_s22, 8  ;;  %2511 = vset.pattern.permute.xlu1 %v2644_v55  ;;  %vm947_vm1 = vcmask 392192   ;;  %vm1702_vm14 = vcmask 7168   ;;  %vm1904_vm15 = vcmask 261120  }
   0xd   : > { %s541_s27 = scalar_lea.vmem %s3140_s2, %s2230_s23  ;;  %s2732_s30 = scalar_lea.vmem %s3141_s3, %s2231_s24  ;;  %2510 = vset.pattern.permute.xlu0 %v2645_v56 }
   0xe   : > { %v585_v1 = vld [vmem:[%s541_s27 + $0x18] sm:$0xff]  ;;  %v584_v2 = vld [vmem:[%s541_s27 + $0x10] sm:$0xff]  ;;  %v583_v3 = vld [vmem:[%s541_s27 + $0x8] sm:$0xff]  ;;  %s2735_s13 = smul.u32 48, %s3152_s22  ;;  %s2232_s25 = sshll.u32 %s3152_s22, 7 }
   0xf   : > { %633 = vmatprep.subr.mxu0 %v585_v1  ;;  %v582_v4 = vld [vmem:[%s541_s27] sm:$0xff]  ;;  %v737_v5 = vld [vmem:[%s2732_s30 + $0xf8] sm:$0xff]  ;;  %v736_v7 = vld [vmem:[%s2732_s30 + $0xf0] sm:$0xff]  ;;  %s2491_s19 = smul.u32 96, %s3152_s22  ;;  %s2935_s28 = scalar_lea.vmem %s3142_s4, %s2232_s25 }
  0x10   : > { %v721_v6 = vld [vmem:[%s2732_s30 + $0x78] sm:$0xff]  ;;  %634 = vmatpush1.msra.mxu0 %v584_v2  ;;  %s2743_s16 = scalar_lea.vmem %s3139_s1, %s2735_s13  ;;  %2234 = vmatprep.subr.mxu1 %v737_v5  ;;  %v720_v8 = vld [vmem:[%s2732_s30 + $0x70] sm:$0xff]  ;;  %v735_v10 = vld [vmem:[%s2732_s30 + $0xe8] sm:$0xff]  ;;  %s554_s14 = scalar_lea.vmem %s3143_s5, %s3152_s22 }
  0x11   : > { %635 = vmatprep.subr.mxu0 %v583_v3  ;;  %v576_v9 = vld [vmem:[%s2743_s16] sm:$0xff]  ;;  %2235 = vmatpush3.msra.mxu1 %v721_v6  ;;  %v719_v11 = vld [vmem:[%s2732_s30 + $0x68] sm:$0xff]  ;;  %v733_v15 = vld [vmem:[%s2732_s30 + $0xd8] sm:$0xff]  ;;  %s2837_s24 = scalar_lea.vmem %s3138_s0, %s2491_s19  ;;  %s562_s20 = scalar_lea.vmem %s3145_s7, %s2735_s13 }
  0x12   : > { %636 = vmatpush1.msra.mxu0 %v582_v4  ;;  %2236 = vmatprep.subr.mxu1 %v736_v7  ;;  %v734_v12 = vld [vmem:[%s2732_s30 + $0xe0] sm:$0xff]  ;;  %v577_v13 = vld [vmem:[%s2743_s16 + $0x8] sm:$0xff]  ;;  %v717_v16 = vld [vmem:[%s2732_s30 + $0x58] sm:$0xff]  ;;  %s3073_s26 = scalar_lea.vmem %s3146_s8, %s2232_s25  ;;  %s575_s19 = scalar_lea.vmem %s3150_s12, %s2735_s13 }
  0x13   : > { %2187 = vmatmul.mubr.msk.f32.vlgmr.msra.gmra.mxu0 %vm586_vm0, %v576_v9  ;;  %2237 = vmatpush3.msra.mxu1 %v720_v8  ;;  %v718_v14 = vld [vmem:[%s2732_s30 + $0x60] sm:$0xff]  ;;  %v732_v17 = vld [vmem:[%s2732_s30 + $0xd0] sm:$0xff]  ;;  %v731_v20 = vld [vmem:[%s2732_s30 + $0xc8] sm:$0xff] }
  0x14   : > { %675 = vmatprep.mubr.f32.mxu0 %v2643_v0  ;;  %2238 = vmatprep.subr.mxu1 %v735_v10  ;;  %v578_v18 = vld [vmem:[%s2743_s16 + $0x10] sm:$0xff]  ;;  %v715_v21 = vld [vmem:[%s2732_s30 + $0x48] sm:$0xff]  ;;  %v730_v22 = vld [vmem:[%s2732_s30 + $0xc0] sm:$0xff] }
  0x15   : > { %2239 = vmatpush3.msra.mxu1 %v719_v11  ;;  %v716_v19 = vld [vmem:[%s2732_s30 + $0x50] sm:$0xff]  ;;  %v579_v23 = vld [vmem:[%s2743_s16 + $0x18] sm:$0xff]  ;;  %v714_v24 = vld [vmem:[%s2732_s30 + $0x40] sm:$0xff] }
  0x16   : > { %2240 = vmatprep.subr.mxu1 %v734_v12  ;;  %v729_v25 = vld [vmem:[%s2732_s30 + $0xb8] sm:$0xff]  ;;  %v728_v27 = vld [vmem:[%s2732_s30 + $0xb0] sm:$0xff]  ;;  %v580_v28 = vld [vmem:[%s2743_s16 + $0x20] sm:$0xff] }
  0x17   : > { %2188 = vmatmul.mubr.msk.f32.gmra.mxu0 %vm586_vm0, %v577_v13  ;;  %2241 = vmatpush3.msra.mxu1 %v718_v14  ;;  %v713_v26 = vld [vmem:[%s2732_s30 + $0x38] sm:$0xff]  ;;  %v712_v29 = vld [vmem:[%s2732_s30 + $0x30] sm:$0xff]  ;;  %v727_v30 = vld [vmem:[%s2732_s30 + $0xa8] sm:$0xff] }
  0x18   : > { %681 = vmatprep.mubr.f32.mxu0 %v2643_v0  ;;  %2242 = vmatprep.subr.mxu1 %v733_v15  ;;  %v711_v31 = vld [vmem:[%s2732_s30 + $0x28] sm:$0xff]  ;;  %v726_v32 = vld [vmem:[%s2732_s30 + $0xa0] sm:$0xff]  ;;  %v725_v35 = vld [vmem:[%s2732_s30 + $0x98] sm:$0xff] }
  0x19   : > { %2243 = vmatpush3.msra.mxu1 %v717_v16  ;;  %v581_v33 = vld [vmem:[%s2743_s16 + $0x28] sm:$0xff]  ;;  %v710_v34 = vld [vmem:[%s2732_s30 + $0x20] sm:$0xff]  ;;  %v709_v36 = vld [vmem:[%s2732_s30 + $0x18] sm:$0xff] }
  0x1a   : > { %2244 = vmatprep.subr.mxu1 %v732_v17  ;;  %v724_v37 = vld [vmem:[%s2732_s30 + $0x90] sm:$0xff]  ;;  %v723_v39 = vld [vmem:[%s2732_s30 + $0x88] sm:$0xff]  ;;  %v722_v41 = vld [vmem:[%s2732_s30 + $0x80] sm:$0xff] }
  0x1b   : > { %2189 = vmatmul.mubr.msk.f32.gmra.mxu0 %vm586_vm0, %v578_v18  ;;  %2245 = vmatpush3.msra.mxu1 %v716_v19  ;;  %v708_v38 = vld [vmem:[%s2732_s30 + $0x10] sm:$0xff]  ;;  %v707_v40 = vld [vmem:[%s2732_s30 + $0x8] sm:$0xff]  ;;  %v706_v42 = vld [vmem:[%s2732_s30] sm:$0xff]  ;;  %s570_s30 = scalar_lea.vmem %s3147_s9, %s3152_s22 }
  0x1c   : > { %687 = vmatprep.mubr.f32.mxu0 %v2643_v0  ;;  %2246 = vmatprep.subr.mxu1 %v731_v20 }
  0x1d   : > { %2247 = vmatpush3.msra.mxu1 %v715_v21 }
  0x1e   : > { %2248 = vmatprep.subr.mxu1 %v730_v22 }
  0x1f   : > { %2190 = vmatmul.mubr.msk.f32.gmra.mxu0 %vm586_vm0, %v579_v23  ;;  %2249 = vmatpush3.msra.mxu1 %v714_v24 }
  0x20   : > { %693 = vmatprep.mubr.f32.mxu0 %v2643_v0  ;;  %2250 = vmatprep.subr.mxu1 %v729_v25 }
  0x21   : > { %2251 = vmatpush3.msra.mxu1 %v713_v26 }
  0x22   : > { %2252 = vmatprep.subr.mxu1 %v728_v27 }
  0x23   : > { %2191 = vmatmul.mubr.msk.f32.gmra.mxu0 %vm586_vm0, %v580_v28  ;;  %2253 = vmatpush3.msra.mxu1 %v712_v29 }
  0x24   : > { %699 = vmatprep.mubr.f32.mxu0 %v2643_v0  ;;  %2254 = vmatprep.subr.mxu1 %v727_v30 }
  0x25   : > { %2255 = vmatpush3.msra.mxu1 %v711_v31 }
  0x26   : > { %2256 = vmatprep.subr.mxu1 %v726_v32  ;;  %v913_v32 = vlaneseq }
  0x27   : > { %2192 = vmatmul.mubr.msk.f32.gmra.mxu0 %vm586_vm0, %v581_v33  ;;  %2257 = vmatpush3.msra.mxu1 %v710_v34 }
  0x28   : > { %2258 = vmatprep.subr.mxu1 %v725_v35  ;;  %v914_v34 = vshrl.u32 %v913_v32, 7 }
  0x29   : > { %2259 = vmatpush3.msra.mxu1 %v709_v36 }
  0x2a   : > { %2260 = vmatprep.subr.mxu1 %v724_v37  ;;  %v915_v36 = vsub.s32 0, %v914_v34 }
  0x2b   : > { %2261 = vmatpush3.msra.mxu1 %v708_v38 }
  0x2c   : > { %2262 = vmatprep.subr.mxu1 %v723_v39 }
  0x2d   : > { %2263 = vmatpush3.msra.mxu1 %v707_v40 }
  0x2e   : > { %2264 = vmatprep.subr.mxu1 %v722_v41 }
  0x2f   : > { %2265 = vmatpush3.msra.mxu1 %v706_v42 }
  0xd3   : > { %v671_v43 = vpop.f32.mrf.mxu0 }
  0xd5   : > { %v2792_v44 = vpop.f32.mrf.mxu0 }
  0xd6   : > { %802 = vmatprep.mubr.f32.mxu1 %v2792_v44 }
  0xd7   : > { %v677_v45 = vpop.f32.mrf.mxu0  ;;  %803 = vmatmul.mubr.f32.vlgmr.msra.gmra.mxu1 %v671_v43 }
  0xd9   : > { %v2795_v46 = vpop.f32.mrf.mxu0 }
  0xda   : > { %807 = vmatprep.mubr.f32.mxu1 %v2795_v46 }
  0xdb   : > { %v683_v47 = vpop.f32.mrf.mxu0  ;;  %808 = vmatmul.mubr.f32.gmra.mxu1 %v677_v45 }
  0xdd   : > { %v2798_v48 = vpop.f32.mrf.mxu0 }
  0xde   : > { %812 = vmatprep.mubr.f32.mxu1 %v2798_v48 }
  0xdf   : > { %v689_v49 = vpop.f32.mrf.mxu0  ;;  %813 = vmatmul.mubr.f32.gmra.mxu1 %v683_v47 }
  0xe1   : > { %v2801_v50 = vpop.f32.mrf.mxu0 }
  0xe2   : > { %817 = vmatprep.mubr.f32.mxu1 %v2801_v50 }
  0xe3   : > { %v695_v51 = vpop.f32.mrf.mxu0  ;;  %818 = vmatmul.mubr.f32.gmra.mxu1 %v689_v49 }
  0xe5   : > { %v2804_v52 = vpop.f32.mrf.mxu0 }
  0xe6   : > { %822 = vmatprep.mubr.f32.mxu1 %v2804_v52 }
  0xe7   : > { %v701_v53 = vpop.f32.mrf.mxu0  ;;  %823 = vmatmul.mubr.f32.gmra.mxu1 %v695_v51 }
  0xe8   : > { %2358 = vmatprep.subr.mxu0 %v701_v53 }
  0xe9   : > { %2359 = vmatpush3.msra.mxu0 %v701_v53  ;;  %v2807_v54 = vpop.f32.mrf.mxu0 }
  0xea   : > { %2360 = vmatprep.subr.mxu0 %v695_v51  ;;  %827 = vmatprep.mubr.f32.mxu1 %v2807_v54 }
  0xeb   : > { %2361 = vmatpush3.msra.mxu0 %v695_v51  ;;  %828 = vmatmul.mubr.f32.gmra.mxu1 %v701_v53 }
  0xec   : > { %2362 = vmatprep.subr.mxu0 %v689_v49 }
  0xed   : > { %2363 = vmatpush3.msra.mxu0 %v689_v49 }
  0xee   : > { %2364 = vmatprep.subr.mxu0 %v683_v47 }
  0xef   : > { %2365 = vmatpush3.msra.mxu0 %v683_v47 }
  0xf0   : > { %2366 = vmatprep.subr.mxu0 %v677_v45 }
  0xf1   : > { %2367 = vmatpush3.msra.mxu0 %v677_v45 }
  0xf2   : > { %2368 = vmatprep.subr.mxu0 %v671_v43 }
  0xf3   : > { %2369 = vmatpush3.msra.mxu0 %v671_v43 }
  0xf4   : > { %2379 = vmatprep.subr.mxu0 %v2807_v54 }
 0x197   : > { %v2266_v57 = vpop.f32.mrf.mxu1 }
 0x199   : > { %v2267_v58 = vpop.f32.mrf.mxu1 }
 0x19a   : > { %v2268_v59 = vadd.f32 %v2267_v58, %v2266_v57  ;;  %v936_v57 = vld [vmem:[%s2837_s24 + $0x8] sm:$0xff]  ;;  %v935_v58 = vld [vmem:[%s2837_s24] sm:$0xff] }
 0x19b   : > { %v2269_v60 = vpop.f32.mrf.mxu1 }
 0x19c   : > { %1214 = vperm.xlu1 %2511, %v2268_v59   ;;  %839 = vrot.lane.b32.xlu0 %v2268_v59, %s2646_s17 }
 0x19d   : > { %v2270_v61 = vpop.f32.mrf.mxu1 }
 0x19e   : > { %v2271_v62 = vadd.f32 %v2270_v61, %v2269_v60 }
 0x19f   : > { %v2272_v63 = vpop.f32.mrf.mxu1 }
 0x1a0   : > { %1163 = vrot.lane.b32.xlu0 %v2268_v59, %s2647_s18  ;;  %1165 = vrot.lane.b32.xlu1 %v2271_v62, %s2647_s18 }
 0x1a1   : > { %2512 = vset.pattern.permute.xlu1 %v2645_v56  ;;  %v2273_v0 = vpop.f32.mrf.mxu1 }
 0x1a2   : > { %v2274_v1 = vadd.f32 %v2273_v0, %v2272_v63  ;;  %v939_v0 = vld [vmem:[%s2837_s24 + $0x20] sm:$0xff] }
 0x1a3   : > { %v2275_v2 = vpop.f32.mrf.mxu1 }
 0x1a4   : > { %890 = vperm.xlu0 %2510, %v2268_v59   ;;  %894 = vperm.xlu1 %2512, %v2271_v62  }
 0x1a5   : > { %v2276_v3 = vpop.f32.mrf.mxu1 }
 0x1a6   : > { %v2277_v6 = vadd.f32 %v2276_v3, %v2275_v2 }
 0x1a7   : > { %v2278_v4 = vpop.f32.mrf.mxu1 }
 0x1a8   : > { %841 = vrot.lane.b32.xlu0 %v2271_v62, %s2646_s17  ;;  %843 = vrot.lane.b32.xlu1 %v2274_v1, %s2646_s17 }
 0x1a9   : > { %2513 = vset.pattern.permute.xlu0 %v2644_v55  ;;  %v2279_v5 = vpop.f32.mrf.mxu1 }
 0x1aa   : > { %v2280_v7 = vadd.f32 %v2279_v5, %v2278_v4 }
 0x1ab   : > { %v2281_v8 = vpop.f32.mrf.mxu1 }
 0x1ac   : > { %1218 = vperm.xlu0 %2513, %v2271_v62   ;;  %898 = vperm.xlu1 %2512, %v2274_v1  }
 0x1ad   : > { %v2282_v9 = vpop.f32.mrf.mxu1 }
 0x1ae   : > { %v2283_v10 = vadd.f32 %v2282_v9, %v2281_v8 }
 0x1b0   : > { %1167 = vrot.lane.b32.xlu0 %v2274_v1, %s2647_s18  ;;  %2514 = vset.pattern.permute.xlu1 %v2644_v55 }
 0x1b1   : > { %1222 = vperm.xlu1 %2514, %v2274_v1   ;;  %2515 = vset.pattern.permute.xlu0 %v2645_v56  ;;  %v937_v1 = vld [vmem:[%s2837_s24 + $0x10] sm:$0xff] }
 0x1b4   : > { %902 = vperm.xlu0 %2515, %v2277_v6  }
 0x1b5   : > { %845 = vrot.lane.b32.xlu1 %v2277_v6, %s2646_s17 }
 0x1b8   : > { %847 = vrot.lane.b32.xlu0 %v2280_v7, %s2646_s17 }
 0x1b9   : > { %1169 = vrot.lane.b32.xlu1 %v2277_v6, %s2647_s18  ;;  %2517 = vset.pattern.permute.xlu0 %v2644_v55 }
 0x1bc   : > { %1171 = vrot.lane.b32.xlu0 %v2280_v7, %s2647_s18 }
 0x1bd   : > { %1226 = vperm.xlu1 %2514, %v2277_v6  }
 0x1c0   : > { %1230 = vperm.xlu0 %2517, %v2280_v7  }
 0x1c1   : > { %2516 = vset.pattern.permute.xlu1 %v2645_v56 }
 0x1c2   : > { %906 = vperm.xlu1 %2516, %v2280_v7  }
 0x1c4   : > { %2518 = vset.pattern.permute.xlu0 %v2645_v56 }
 0x1c5   : > { %910 = vperm.xlu0 %2518, %v2283_v10  }
 0x1c6   : > { %849 = vrot.lane.b32.xlu1 %v2283_v10, %s2646_s17  ;;  %s557_s17 = scalar_lea.vmem %s3144_s6, %s3152_s22 }
 0x1c7   : > { %2519 = vset.pattern.permute.xlu1 %v2644_v55 }
 0x1ca   : > { %1173 = vrot.lane.b32.xlu1 %v2283_v10, %s2647_s18 }
 0x1ce   : > { %1234 = vperm.xlu1 %2519, %v2283_v10  }
 0x20e   : > { %v840_v11 = vpop.permute.xlu0 %839 }
 0x20f   : > { %857 = vxpose.xlu0.b32.start [1/6] (short) (narrow) %v840_v11, 8 }
 0x212   : > { %v1164_v12 = vpop.permute.xlu0 %1163 }
 0x213   : > { %1181 = vxpose.xlu1.b32.start [1/6] (short) (narrow) %v1164_v12, 8 }
 0x217   : > { %v1215_v13 = vpop.permute.xlu1 %1214 }
 0x21b   : > { %v1166_v14 = vpop.permute.xlu1 %1165 }
 0x21c   : > { %1182 = vxpose.xlu1.b32.cont [2/6] (short) (narrow) %v1166_v14, 8 }
 0x21f   : > { %v891_v15 = vpop.permute.xlu0 %890  ;;  %v895_v16 = vpop.permute.xlu1 %894 }
 0x223   : > { %v842_v17 = vpop.permute.xlu0 %841  ;;  %v844_v18 = vpop.permute.xlu1 %843 }
 0x224   : > { %858 = vxpose.xlu0.b32.cont [2/6] (short) (narrow) %v842_v17, 8  ;;  %v2205_v17 = vld [vmem:[%s2837_s24 + $0x30] sm:$0xff] }
 0x227   : > { %v2828_v19 = vpop.permute.xlu0 %1218  ;;  %v899_v20 = vpop.permute.xlu1 %898 }
 0x228   : > { %859 = vxpose.xlu0.b32.cont [3/6] (short) (narrow) %v844_v18, 8 }
 0x22b   : > { %v1168_v21 = vpop.permute.xlu0 %1167 }
 0x22c   : > { %v1223_v22 = vpop.permute.xlu1 %1222  ;;  %1183 = vxpose.xlu1.b32.cont [3/6] (short) (narrow) %v1168_v21, 8 }
 0x22f   : > { %v903_v23 = vpop.permute.xlu0 %902 }
 0x230   : > { %v846_v24 = vpop.permute.xlu1 %845 }
 0x231   : > { %860 = vxpose.xlu0.b32.cont [4/6] (short) (narrow) %v846_v24, 8 }
 0x233   : > { %v848_v25 = vpop.permute.xlu0 %847 }
 0x234   : > { %v1170_v26 = vpop.permute.xlu1 %1169 }
 0x235   : > { %861 = vxpose.xlu0.b32.cont [5/6] (short) (narrow) %v848_v25, 8  ;;  %1184 = vxpose.xlu1.b32.cont [4/6] (short) (narrow) %v1170_v26, 8 }
 0x237   : > { %v1172_v27 = vpop.permute.xlu0 %1171 }
 0x238   : > { %v2830_v28 = vpop.permute.xlu1 %1226 }
 0x239   : > { %1185 = vxpose.xlu1.b32.cont [5/6] (short) (narrow) %v1172_v27, 8  ;;  %v2207_v27 = vld [vmem:[%s2837_s24 + $0x40] sm:$0xff] }
 0x23b   : > { %v1231_v33 = vpop.permute.xlu0 %1230 }
 0x23d   : > { %v907_v29 = vpop.permute.xlu1 %906 }
 0x240   : > { %v911_v35 = vpop.permute.xlu0 %910 }
 0x241   : > { %v850_v30 = vpop.permute.xlu1 %849 }
 0x242   : > { %862 = vxpose.xlu0.b32.end [6/6] (short) (narrow) %v850_v30, 8 }
 0x245   : > { %v1174_v31 = vpop.permute.xlu1 %1173 }
 0x246   : > { %1186 = vxpose.xlu1.b32.end [6/6] (short) (narrow) %v1174_v31, 8 }
 0x249   : > { %v1235_v37 = vpop.permute.xlu1 %1234 }
 0x26b   : > { %2520 = vset.pattern.permute.xlu0 %v2644_v55 }
 0x2aa   : > { %v873_v38 = vpop.trf.xlu0 }
 0x2ab   : > { %v916_v39 = vrot.slane %v873_v38, %v915_v36 }
 0x2ad   : > { %v918_v40 = vadd.f32 %v916_v39, %v895_v16  ;;  %v917_v41 = vadd.f32 %v916_v39, %v891_v15  ;;  %v921_v42 = vadd.f32 %v916_v39, %v907_v29  ;;  %v919_v43 = vadd.f32 %v916_v39, %v899_v20  ;;  %v938_v16 = vld [vmem:[%s2837_s24 + $0x18] sm:$0xff]  ;;  %v940_v29 = vld [vmem:[%s2837_s24 + $0x28] sm:$0xff] }
 0x2ae   : > { %v1197_v45 = vpop.trf.xlu1  ;;  %v920_v47 = vadd.f32 %v916_v39, %v903_v23  ;;  %v922_v49 = vadd.f32 %v916_v39, %v911_v35 }
 0x2af   : > { %v1240_v51 = vrot.slane %v1197_v45, %v915_v36  ;;  %v924_v53 = vmul.f32 0.2, %v918_v40  ;;  %v923_v55 = vmul.f32 0.2, %v917_v41  ;;  %v927_v56 = vmul.f32 0.2, %v921_v42 }
 0x2b0   : > { %v925_v59 = vmul.f32 0.2, %v919_v43  ;;  %v926_v60 = vmul.f32 0.2, %v920_v47  ;;  %v928_v8 = vmul.f32 0.2, %v922_v49 }
 0x2b1   : > { %v930_v61 = vmax.f32 %v918_v40, %v924_v53  ;;  %v929_v62 = vmax.f32 %v917_v41, %v923_v55  ;;  %v933_v63 = vmax.f32 %v921_v42, %v927_v56  ;;  %v1241_v2 = vadd.f32 %v1240_v51, %v1215_v13  ;;  %v2209_v41 = vld [vmem:[%s2837_s24 + $0x50] sm:$0xff]  ;;  %v2206_v42 = vld [vmem:[%s2837_s24 + $0x38] sm:$0xff] }
 0x2b2   : > { %v931_v3 = vmax.f32 %v919_v43, %v925_v59  ;;  %v1243_v4 = vadd.f32 %v1240_v51, %v1223_v22  ;;  %v932_v11 = vmax.f32 %v920_v47, %v926_v60  ;;  %v934_v18 = vmax.f32 %v922_v49, %v928_v8 }
 0x2b3   : > { %v2843_v5 = vadd.f32 %v936_v57, %v930_v61  ;;  %v2845_v6 = vadd.f32 %v935_v58, %v929_v62  ;;  %v1247_v7 = vmul.f32 0.2, %v1241_v2  ;;  %v2847_v9 = vadd.f32 %v939_v0, %v933_v63  ;;  %v2210_v58 = vld [vmem:[%s2837_s24 + $0x58] sm:$0xff] }
 0x2b4   : > { %v2849_v10 = vadd.f32 %v937_v1, %v931_v3  ;;  %v1249_v12 = vmul.f32 0.2, %v1243_v4  ;;  %v1245_v20 = vadd.f32 %v1240_v51, %v1231_v33  ;;  %v1242_v21 = vadd.f32 %v1240_v51, %v2828_v19 }
 0x2b5   : > { %v951_v13 = vsel %vm947_vm1, %v2843_v5, -inf  ;;  %v948_v14 = vsel %vm947_vm1, %v2845_v6, -inf  ;;  %v1253_v15 = vmax.f32 %v1241_v2, %v1247_v7  ;;  %v960_v22 = vsel %vm947_vm1, %v2847_v9, -inf }
 0x2b6   : > { %952 = vmax.xlane.f32.xlu1 %v951_v13  ;;  %949 = vmax.xlane.f32.xlu0 %v948_v14  ;;  %v954_v23 = vsel %vm947_vm1, %v2849_v10, -inf  ;;  %v944_v24 = vadd.f32 %v938_v16, %v932_v11  ;;  %v1255_v25 = vmax.f32 %v1243_v4, %v1249_v12  ;;  %v1251_v30 = vmul.f32 0.2, %v1245_v20 }
 0x2b7   : > { %v1266_v26 = vadd.f32 %v2205_v17, %v1253_v15  ;;  %v1248_v31 = vmul.f32 0.2, %v1242_v21  ;;  %v1244_v32 = vadd.f32 %v1240_v51, %v2830_v28  ;;  %v946_v34 = vadd.f32 %v940_v29, %v934_v18 }
 0x2b8   : > { %v957_v19 = vsel %vm947_vm1, %v944_v24, -inf  ;;  %v1268_v33 = vadd.f32 %v2207_v27, %v1255_v25  ;;  %v1246_v35 = vadd.f32 %v1240_v51, %v1235_v37  ;;  %v1257_v38 = vmax.f32 %v1245_v20, %v1251_v30  ;;  %v2208_v37 = vld [vmem:[%s2837_s24 + $0x48] sm:$0xff] }
 0x2b9   : > { %v1272_v36 = vsel %vm947_vm1, %v1266_v26, -inf  ;;  %v1254_v39 = vmax.f32 %v1242_v21, %v1248_v31  ;;  %v1250_v40 = vmul.f32 0.2, %v1244_v32  ;;  %v963_v43 = vsel %vm947_vm1, %v946_v34, -inf }
 0x2ba   : > { %961 = vmax.xlane.f32.xlu1 %v960_v22  ;;  %955 = vmax.xlane.f32.xlu0 %v954_v23  ;;  %v1278_v28 = vsel %vm947_vm1, %v1268_v33, -inf  ;;  %v1270_v45 = vadd.f32 %v2209_v41, %v1257_v38  ;;  %v1252_v53 = vmul.f32 0.2, %v1246_v35 }
 0x2bb   : > { %v1267_v47 = vadd.f32 %v2206_v42, %v1254_v39  ;;  %v1256_v49 = vmax.f32 %v1244_v32, %v1250_v40 }
 0x2bc   : > { %v1284_v51 = vsel %vm947_vm1, %v1270_v45, -inf  ;;  %v1258_v57 = vmax.f32 %v1246_v35, %v1252_v53 }
 0x2bd   : > { %v1275_v55 = vsel %vm947_vm1, %v1267_v47, -inf  ;;  %v1269_v56 = vadd.f32 %v2208_v37, %v1256_v49 }
 0x2be   : > { %1273 = vmax.xlane.f32.xlu1 %v1272_v36  ;;  %958 = vmax.xlane.f32.xlu0 %v957_v19  ;;  %v1271_v60 = vadd.f32 %v2210_v58, %v1258_v57 }
 0x2bf   : > { %v1281_v59 = vsel %vm947_vm1, %v1269_v56, -inf }
 0x2c0   : > { %v1287_v61 = vsel %vm947_vm1, %v1271_v60, -inf }
 0x2c2   : > { %1279 = vmax.xlane.f32.xlu1 %v1278_v28  ;;  %964 = vmax.xlane.f32.xlu0 %v963_v43 }
 0x2c6   : > { %1285 = vmax.xlane.f32.xlu1 %v1284_v51  ;;  %1276 = vmax.xlane.f32.xlu0 %v1275_v55 }
 0x2ca   : > { %1282 = vmax.xlane.f32.xlu0 %v1281_v59 }
 0x2ce   : > { %1288 = vmax.xlane.f32.xlu0 %v1287_v61 }
 0x33f   : > { %v953_v62 = vpop.xlane.xlu1 %952  ;;  %v950_v63 = vpop.xlane.xlu0 %949 }
 0x340   : > { %v967_v0 = vsub.f32 %v2843_v5, %v953_v62  ;;  %v966_v1 = vsub.f32 %v2845_v6, %v950_v63 }
 0x342   : > { %v974_v2 = vmul.f32 1.442695, %v967_v0  ;;  %v972_v3 = vmul.f32 1.442695, %v966_v1  ;;  %v1502_v0 = vld [vmem:[%s2935_s28 + $0x78] sm:$0xff]  ;;  %v1501_v1 = vld [vmem:[%s2935_s28 + $0x70] sm:$0xff] }
 0x343   : > { %v962_v4 = vpop.xlane.xlu1 %961  ;;  %v956_v7 = vpop.xlane.xlu0 %955  ;;  %2400 = vmatprep.subr.mxu1 %v1502_v0 }
 0x344   : > { %2521 = vpow2.f32 %v974_v2  ;;  %v970_v8 = vsub.f32 %v2847_v9, %v962_v4  ;;  %v968_v11 = vsub.f32 %v2849_v10, %v956_v7  ;;  %2401 = vmatpush3.msra.mxu1 %v1502_v0  ;;  %v1500_v2 = vld [vmem:[%s2935_s28 + $0x68] sm:$0xff] }
 0x345   : > { %2523 = vpow2.f32 %v972_v3  ;;  %2402 = vmatprep.subr.mxu1 %v1501_v1  ;;  %v1499_v3 = vld [vmem:[%s2935_s28 + $0x60] sm:$0xff] }
 0x346   : > { %v976_v12 = vmul.f32 1.442695, %v968_v11  ;;  %v980_v13 = vmul.f32 1.442695, %v970_v8  ;;  %2403 = vmatpush3.msra.mxu1 %v1501_v1 }
 0x347   : > { %v1274_v14 = vpop.xlane.xlu1 %1273  ;;  %v959_v15 = vpop.xlane.xlu0 %958  ;;  %2404 = vmatprep.subr.mxu1 %v1500_v2 }
 0x348   : > { %v1290_v16 = vsub.f32 %v1266_v26, %v1274_v14  ;;  %v969_v17 = vsub.f32 %v944_v24, %v959_v15  ;;  %2525 = vpow2.f32 %v976_v12  ;;  %2405 = vmatpush3.msra.mxu1 %v1500_v2 }
 0x349   : > { %2527 = vpow2.f32 %v980_v13  ;;  %2406 = vmatprep.subr.mxu1 %v1499_v3 }
 0x34a   : > { %v978_v5 = vmul.f32 1.442695, %v969_v17  ;;  %v1296_v6 = vmul.f32 1.442695, %v1290_v16  ;;  %2407 = vmatpush3.msra.mxu1 %v1499_v3 }
 0x34b   : > { %v1280_v18 = vpop.xlane.xlu1 %1279  ;;  %v965_v20 = vpop.xlane.xlu0 %964 }
 0x34c   : > { %v1292_v21 = vsub.f32 %v1268_v33, %v1280_v18  ;;  %v971_v22 = vsub.f32 %v946_v34, %v965_v20  ;;  %2529 = vpow2.f32 %v978_v5 }
 0x34d   : > { %2531 = vpow2.f32 %v1296_v6 }
 0x34e   : > { %v982_v23 = vmul.f32 1.442695, %v971_v22  ;;  %v1300_v9 = vmul.f32 1.442695, %v1292_v21 }
 0x34f   : > { %v1286_v10 = vpop.xlane.xlu1 %1285  ;;  %v1277_v25 = vpop.xlane.xlu0 %1276 }
 0x350   : > { %v1294_v27 = vsub.f32 %v1270_v45, %v1286_v10  ;;  %v1291_v29 = vsub.f32 %v1267_v47, %v1277_v25  ;;  %2533 = vpow2.f32 %v982_v23 }
 0x351   : > { %v2881_v30 = vpop.eup %2521  ;;  %2535 = vpow2.f32 %v1300_v9 }
 0x352   : > { %v2883_v24 = vpop.eup %2523  ;;  %v1298_v26 = vmul.f32 1.442695, %v1291_v29  ;;  %v987_v31 = vsel %vm947_vm1, %v2881_v30, 0.0  ;;  %v1304_v32 = vmul.f32 1.442695, %v1294_v27 }
 0x353   : > { %988 = vadd.xlane.f32.xlu0 %v987_v31  ;;  %v984_v19 = vsel %vm947_vm1, %v2883_v24, 0.0  ;;  %v1283_v33 = vpop.xlane.xlu0 %1282 }
 0x354   : > { %985 = vadd.xlane.f32.xlu1 %v984_v19  ;;  %v1293_v34 = vsub.f32 %v1269_v56, %v1283_v33  ;;  %2537 = vpow2.f32 %v1298_v26 }
 0x355   : > { %v2889_v35 = vpop.eup %2525  ;;  %2539 = vpow2.f32 %v1304_v32 }
 0x356   : > { %v1302_v36 = vmul.f32 1.442695, %v1293_v34  ;;  %v990_v38 = vsel %vm947_vm1, %v2889_v35, 0.0  ;;  %v2893_v40 = vpop.eup %2527 }
 0x357   : > { %v1289_v39 = vpop.xlane.xlu0 %1288  ;;  %v996_v43 = vsel %vm947_vm1, %v2893_v40, 0.0 }
 0x358   : > { %2541 = vpow2.f32 %v1302_v36  ;;  %991 = vadd.xlane.f32.xlu1 %v990_v38  ;;  %v1295_v41 = vsub.f32 %v1271_v60, %v1289_v39  ;;  %v1497_v36 = vld [vmem:[%s2935_s28 + $0x50] sm:$0xff]  ;;  %v1496_v38 = vld [vmem:[%s2935_s28 + $0x48] sm:$0xff]  ;;  %v1495_v39 = vld [vmem:[%s2935_s28 + $0x40] sm:$0xff] }
 0x359   : > { %v2895_v42 = vpop.eup %2529 }
 0x35a   : > { %v1306_v28 = vmul.f32 1.442695, %v1295_v41  ;;  %v993_v45 = vsel %vm947_vm1, %v2895_v42, 0.0  ;;  %v2901_v47 = vpop.eup %2531  ;;  %v1493_v41 = vld [vmem:[%s2935_s28 + $0x30] sm:$0xff] }
 0x35b   : > { %994 = vadd.xlane.f32.xlu0 %v993_v45  ;;  %v1308_v53 = vsel %vm947_vm1, %v2901_v47, 0.0  ;;  %v1489_v45 = vld [vmem:[%s2935_s28 + $0x10] sm:$0xff] }
 0x35c   : > { %2543 = vpow2.f32 %v1306_v28  ;;  %997 = vadd.xlane.f32.xlu1 %v996_v43  ;;  %v1491_v28 = vld [vmem:[%s2935_s28 + $0x20] sm:$0xff]  ;;  %v1490_v43 = vld [vmem:[%s2935_s28 + $0x18] sm:$0xff] }
 0x35d   : > { %v2903_v49 = vpop.eup %2533 }
 0x35e   : > { %v999_v37 = vsel %vm947_vm1, %v2903_v49, 0.0  ;;  %v2909_v51 = vpop.eup %2535 }
 0x35f   : > { %1000 = vadd.xlane.f32.xlu0 %v999_v37  ;;  %v1314_v56 = vsel %vm947_vm1, %v2909_v51, 0.0 }
 0x360   : > { %1309 = vadd.xlane.f32.xlu1 %v1308_v53 }
 0x361   : > { %v2911_v55 = vpop.eup %2537 }
 0x362   : > { %v1311_v57 = vsel %vm947_vm1, %v2911_v55, 0.0  ;;  %v2917_v58 = vpop.eup %2539 }
 0x363   : > { %1312 = vadd.xlane.f32.xlu0 %v1311_v57  ;;  %v1320_v61 = vsel %vm947_vm1, %v2917_v58, 0.0 }
 0x364   : > { %1315 = vadd.xlane.f32.xlu1 %v1314_v56 }
 0x365   : > { %v2919_v59 = vpop.eup %2541 }
 0x366   : > { %v1317_v60 = vsel %vm947_vm1, %v2919_v59, 0.0 }
 0x367   : > { %1318 = vadd.xlane.f32.xlu0 %v1317_v60 }
 0x368   : > { %1321 = vadd.xlane.f32.xlu1 %v1320_v61 }
 0x369   : > { %v2925_v62 = vpop.eup %2543 }
 0x36a   : > { %v1323_v63 = vsel %vm947_vm1, %v2925_v62, 0.0 }
 0x36b   : > { %1324 = vadd.xlane.f32.xlu0 %v1323_v63 }
 0x3dc   : > { %v989_v4 = vpop.xlane.xlu0 %988 }
 0x3dd   : > { %v986_v7 = vpop.xlane.xlu1 %985  ;;  %2545 = vrcp.f32 %v989_v4 }
 0x3de   : > { %2547 = vrcp.f32 %v986_v7 }
 0x3e1   : > { %v992_v8 = vpop.xlane.xlu1 %991 }
 0x3e2   : > { %2549 = vrcp.f32 %v992_v8 }
 0x3e4   : > { %v995_v12 = vpop.xlane.xlu0 %994 }
 0x3e5   : > { %v998_v11 = vpop.xlane.xlu1 %997 }
 0x3e6   : > { %2551 = vrcp.f32 %v998_v11 }
 0x3e7   : > { %2553 = vrcp.f32 %v995_v12 }
 0x3e8   : > { %v1001_v14 = vpop.xlane.xlu0 %1000 }
 0x3e9   : > { %v1310_v13 = vpop.xlane.xlu1 %1309 }
 0x3ea   : > { %v2546_v15 = vpop.eup %2545  ;;  %2555 = vrcp.f32 %v1310_v13 }
 0x3eb   : > { %v2548_v16 = vpop.eup %2547  ;;  %v1005_v17 = vmul.f32 %v2546_v15, %v2881_v30  ;;  %2557 = vrcp.f32 %v1001_v14 }
 0x3ec   : > { %v1003_v5 = vmul.f32 %v2548_v16, %v2883_v24  ;;  %v1313_v18 = vpop.xlane.xlu0 %1312 }
 0x3ed   : > { %v1316_v6 = vpop.xlane.xlu1 %1315 }
 0x3ee   : > { %2559 = vrcp.f32 %v1316_v6  ;;  %2370 = vmatprep.mubr.msk.f32.mxu0 %vm947_vm1, %v1003_v5 }
 0x3ef   : > { %v2550_v20 = vpop.eup %2549  ;;  %2561 = vrcp.f32 %v1313_v18  ;;  %2371 = vmatmul.mubr.msk.f32.vlgmr.msra.gmra.mxu0 %vm947_vm1, %v1005_v17 }
 0x3f0   : > { %2380 = vmatpush3.msra.mxu0 %v2807_v54  ;;  %v1007_v21 = vmul.f32 %v2550_v20, %v2889_v35  ;;  %v1319_v23 = vpop.xlane.xlu0 %1318  ;;  %v1498_v35 = vld [vmem:[%s2935_s28 + $0x58] sm:$0xff] }
 0x3f1   : > { %2381 = vmatprep.subr.mxu0 %v2804_v52  ;;  %v1322_v22 = vpop.xlane.xlu1 %1321  ;;  %2408 = vmatprep.subr.mxu1 %v1498_v35 }
 0x3f2   : > { %2563 = vrcp.f32 %v1322_v22  ;;  %2382 = vmatpush3.msra.mxu0 %v2804_v52  ;;  %2373 = vmatprep.mubr.msk.f32.mxu0 %vm947_vm1, %v1007_v21 }
 0x3f3   : > { %v2552_v9 = vpop.eup %2551  ;;  %2565 = vrcp.f32 %v1319_v23  ;;  %2383 = vmatprep.subr.mxu0 %v2801_v50  ;;  %2409 = vmatpush3.msra.mxu1 %v1498_v35 }
 0x3f4   : > { %v2554_v10 = vpop.eup %2553  ;;  %2384 = vmatpush3.msra.mxu0 %v2801_v50  ;;  %v1011_v54 = vmul.f32 %v2552_v9, %v2893_v40  ;;  %v1325_v25 = vpop.xlane.xlu0 %1324  ;;  %2410 = vmatprep.subr.mxu1 %v1497_v36  ;;  %v1494_v40 = vld [vmem:[%s2935_s28 + $0x38] sm:$0xff] }
 0x3f5   : > { %2385 = vmatprep.subr.mxu0 %v2798_v48  ;;  %v1009_v27 = vmul.f32 %v2554_v10, %v2895_v42  ;;  %2567 = vrcp.f32 %v1325_v25  ;;  %2411 = vmatpush3.msra.mxu1 %v1497_v36  ;;  %v1492_v42 = vld [vmem:[%s2935_s28 + $0x28] sm:$0xff] }
 0x3f6   : > { %2386 = vmatpush3.msra.mxu0 %v2798_v48  ;;  %2412 = vmatprep.subr.mxu1 %v1496_v38 }
 0x3f7   : > { %v2556_v52 = vpop.eup %2555  ;;  %2374 = vmatmul.mubr.msk.f32.gmra.mxu0 %vm947_vm1, %v1009_v27  ;;  %2387 = vmatprep.subr.mxu0 %v2795_v46 }
 0x3f8   : > { %v2558_v29 = vpop.eup %2557  ;;  %2376 = vmatprep.mubr.msk.f32.mxu0 %vm947_vm1, %v1011_v54  ;;  %2388 = vmatpush3.msra.mxu0 %v2795_v46  ;;  %v1327_v50 = vmul.f32 %v2556_v52, %v2901_v47  ;;  %v1488_v47 = vld [vmem:[%s2935_s28 + $0x8] sm:$0xff] }
 0x3f9   : > { %2389 = vmatprep.subr.mxu0 %v2792_v44  ;;  %v1013_v30 = vmul.f32 %v2558_v29, %v2903_v49  ;;  %2413 = vmatpush3.msra.mxu1 %v1496_v38  ;;  %v1487_v49 = vld [vmem:[%s2935_s28] sm:$0xff] }
 0x3fa   : > { %2390 = vmatpush3.msra.mxu0 %v2792_v44  ;;  %2414 = vmatprep.subr.mxu1 %v1495_v39 }
 0x3fb   : > { %v2560_v48 = vpop.eup %2559  ;;  %2377 = vmatmul.mubr.msk.f32.gmra.mxu0 %vm947_vm1, %v1013_v30  ;;  %2415 = vmatpush3.msra.mxu1 %v1495_v39 }
 0x3fc   : > { %v2562_v24 = vpop.eup %2561  ;;  %2391 = vmatprep.mubr.msk.f32.mxu0 %vm947_vm1, %v1327_v50  ;;  %v1331_v26 = vmul.f32 %v2560_v48, %v2909_v51  ;;  %2416 = vmatprep.subr.mxu1 %v1494_v40 }
 0x3fd   : > { %v1329_v46 = vmul.f32 %v2562_v24, %v2911_v55  ;;  %2417 = vmatpush3.msra.mxu1 %v1494_v40 }
 0x3fe   : > { %2418 = vmatprep.subr.mxu1 %v1493_v41 }
 0x3ff   : > { %v2564_v31 = vpop.eup %2563  ;;  %2392 = vmatmul.mubr.msk.f32.vlgmr.msra.gmra.mxu0 %vm947_vm1, %v1329_v46  ;;  %2419 = vmatpush3.msra.mxu1 %v1493_v41 }
 0x400   : > { %v2566_v32 = vpop.eup %2565  ;;  %2394 = vmatprep.mubr.msk.f32.mxu0 %vm947_vm1, %v1331_v26  ;;  %v1335_v44 = vmul.f32 %v2564_v31, %v2917_v58  ;;  %2420 = vmatprep.subr.mxu1 %v1492_v42 }
 0x401   : > { %v1333_v19 = vmul.f32 %v2566_v32, %v2919_v59  ;;  %2421 = vmatpush3.msra.mxu1 %v1492_v42 }
 0x402   : > { %v2568_v33 = vpop.eup %2567  ;;  %2422 = vmatprep.subr.mxu1 %v1491_v28 }
 0x403   : > { %2395 = vmatmul.mubr.msk.f32.gmra.mxu0 %vm947_vm1, %v1333_v19  ;;  %v1337_v34 = vmul.f32 %v2568_v33, %v2925_v62  ;;  %2423 = vmatpush3.msra.mxu1 %v1491_v28 }
 0x404   : > { %2397 = vmatprep.mubr.msk.f32.mxu0 %vm947_vm1, %v1335_v44  ;;  %2424 = vmatprep.subr.mxu1 %v1490_v43 }
 0x405   : > { %2425 = vmatpush3.msra.mxu1 %v1490_v43 }
 0x406   : > { %2426 = vmatprep.subr.mxu1 %v1489_v45 }
 0x407   : > { %2398 = vmatmul.mubr.msk.f32.gmra.mxu0 %vm947_vm1, %v1337_v34  ;;  %2427 = vmatpush3.msra.mxu1 %v1489_v45 }
 0x408   : > { %2428 = vmatprep.subr.mxu1 %v1488_v47 }
 0x409   : > { %2429 = vmatpush3.msra.mxu1 %v1488_v47 }
 0x40a   : > { %2430 = vmatprep.subr.mxu1 %v1487_v49 }
 0x40b   : > { %2431 = vmatpush3.msra.mxu1 %v1487_v49 }
 0x4af   : > { %v2372_v53 = vpop.f32.mrf.mxu0 }
 0x4b0   : > { %v1134_v37 = vmin.f32 %v2372_v53, 0.0  ;;  %vm1128_vm3 = vcmp.gt.f32.partialorder %v2372_v53, 0.0 }
 0x4b1   : > { %v1098_v51 = vpop.f32.mrf.mxu0 }
 0x4b2   : > { %v1141_v55 = vmul.f32 1.442695, %v1134_v37  ;;  %v1133_v56 = vmin.f32 %v1098_v51, 0.0  ;;  %vm1127_vm2 = vcmp.gt.f32.partialorder %v1098_v51, 0.0 }
 0x4b4   : > { %2569 = vpow2.f32 %v1141_v55  ;;  %v1139_v57 = vmul.f32 1.442695, %v1133_v56 }
 0x4b6   : > { %2571 = vpow2.f32 %v1139_v57 }
 0x4b7   : > { %v2375_v58 = vpop.f32.mrf.mxu0 }
 0x4b8   : > { %v1136_v59 = vmin.f32 %v2375_v58, 0.0  ;;  %vm1130_vm5 = vcmp.gt.f32.partialorder %v2375_v58, 0.0 }
 0x4b9   : > { %v1108_v60 = vpop.f32.mrf.mxu0 }
 0x4ba   : > { %v1145_v61 = vmul.f32 1.442695, %v1136_v59  ;;  %v1135_v62 = vmin.f32 %v1108_v60, 0.0  ;;  %vm1129_vm4 = vcmp.gt.f32.partialorder %v1108_v60, 0.0 }
 0x4bb   : > { %v2988_v63 = vpop.f32.mrf.mxu0 }
 0x4bc   : > { %2573 = vpow2.f32 %v1145_v61  ;;  %v1143_v0 = vmul.f32 1.442695, %v1135_v62  ;;  %v1138_v1 = vmin.f32 %v2988_v63, 0.0  ;;  %vm1132_vm7 = vcmp.gt.f32.partialorder %v2988_v63, 0.0 }
 0x4bd   : > { %v1118_v2 = vpop.f32.mrf.mxu0 }
 0x4be   : > { %2575 = vpow2.f32 %v1143_v0  ;;  %v1149_v3 = vmul.f32 1.442695, %v1138_v1  ;;  %v1137_v4 = vmin.f32 %v1118_v2, 0.0  ;;  %vm1131_vm6 = vcmp.gt.f32.partialorder %v1118_v2, 0.0 }
 0x4bf   : > { %v2991_v7 = vpop.f32.mrf.mxu0 }
 0x4c0   : > { %2577 = vpow2.f32 %v1149_v3  ;;  %v1147_v8 = vmul.f32 1.442695, %v1137_v4  ;;  %v1458_v11 = vmin.f32 %v2991_v7, 0.0  ;;  %vm1452_vm9 = vcmp.gt.f32.partialorder %v2991_v7, 0.0 }
 0x4c1   : > { %v2570_v12 = vpop.eup %2569  ;;  %v1422_v13 = vpop.f32.mrf.mxu0 }
 0x4c2   : > { %2579 = vpow2.f32 %v1147_v8  ;;  %v1465_v14 = vmul.f32 1.442695, %v1458_v11  ;;  %v1457_v16 = vmin.f32 %v1422_v13, 0.0  ;;  %v2200_v5 = vadd.f32 -1.0, %v2570_v12  ;;  %v2224_v11 = vld [vmem:[%s557_s17] ss:$0 sm:$0xff] }
 0x4c3   : > { %v2572_v15 = vpop.eup %2571  ;;  %v2994_v17 = vpop.f32.mrf.mxu0  ;;  %vm1451_vm8 = vcmp.gt.f32.partialorder %v1422_v13, 0.0 }
 0x4c4   : > { %2581 = vpow2.f32 %v1465_v14  ;;  %v1460_v6 = vmin.f32 %v2994_v17, 0.0  ;;  %v1463_v18 = vmul.f32 1.442695, %v1457_v16  ;;  %v2199_v21 = vadd.f32 -1.0, %v2572_v15 }
 0x4c5   : > { %v1432_v20 = vpop.f32.mrf.mxu0  ;;  %v3001_v54 = vsel %vm1128_vm3, %v2372_v53, %v2200_v5  ;;  %vm1454_vm11 = vcmp.gt.f32.partialorder %v2994_v17, 0.0 }
 0x4c6   : > { %v1469_v22 = vmul.f32 1.442695, %v1460_v6  ;;  %v1459_v23 = vmin.f32 %v1432_v20, 0.0  ;;  %2583 = vpow2.f32 %v1463_v18  ;;  %v2999_v10 = vsel %vm1127_vm2, %v1098_v51, %v2199_v21 }
 0x4c7   : > { %v2997_v9 = vpop.f32.mrf.mxu0  ;;  %2432 = vmatprep.mubr.f32.mxu1 %v2999_v10  ;;  %vm1453_vm10 = vcmp.gt.f32.partialorder %v1432_v20, 0.0 }
 0x4c8   : > { %2585 = vpow2.f32 %v1469_v22  ;;  %v1467_v25 = vmul.f32 1.442695, %v1459_v23  ;;  %v1462_v27 = vmin.f32 %v2997_v9, 0.0  ;;  %2433 = vmatmul.mubr.f32.vlgmr.msra.gmra.mxu1 %v3001_v54  ;;  %vm1456_vm13 = vcmp.gt.f32.partialorder %v2997_v9, 0.0 }
 0x4c9   : > { %v2574_v52 = vpop.eup %2573  ;;  %v1442_v29 = vpop.f32.mrf.mxu0 }
 0x4ca   : > { %2587 = vpow2.f32 %v1467_v25  ;;  %v1473_v50 = vmul.f32 1.442695, %v1462_v27  ;;  %v1461_v30 = vmin.f32 %v1442_v29, 0.0  ;;  %v2202_v24 = vadd.f32 -1.0, %v2574_v52 }
 0x4cb   : > { %v2576_v48 = vpop.eup %2575  ;;  %vm1455_vm12 = vcmp.gt.f32.partialorder %v1442_v29, 0.0 }
 0x4cc   : > { %2589 = vpow2.f32 %v1473_v50  ;;  %v1471_v26 = vmul.f32 1.442695, %v1461_v30  ;;  %v2201_v46 = vadd.f32 -1.0, %v2576_v48  ;;  %v3009_v19 = vsel %vm1130_vm5, %v2375_v58, %v2202_v24 }
 0x4cd   : > { %v2578_v31 = vpop.eup %2577 }
 0x4ce   : > { %2591 = vpow2.f32 %v1471_v26  ;;  %v3006_v32 = vsel %vm1129_vm4, %v1108_v60, %v2201_v46  ;;  %v2204_v33 = vadd.f32 -1.0, %v2578_v31  ;;  %v2223_v60 = vld [vmem:[%s554_s14] ss:$0 sm:$0xff] }
 0x4cf   : > { %v2580_v44 = vpop.eup %2579  ;;  %2435 = vmatprep.mubr.f32.mxu1 %v3006_v32 }
 0x4d0   : > { %2436 = vmatmul.mubr.f32.gmra.mxu1 %v3009_v19  ;;  %v2203_v34 = vadd.f32 -1.0, %v2580_v44  ;;  %v3017_v38 = vsel %vm1132_vm7, %v2988_v63, %v2204_v33 }
 0x4d1   : > { %v2582_v35 = vpop.eup %2581 }
 0x4d2   : > { %v3013_v36 = vsel %vm1131_vm6, %v1118_v2, %v2203_v34  ;;  %v2218_v40 = vadd.f32 -1.0, %v2582_v35 }
 0x4d3   : > { %2438 = vmatprep.mubr.f32.mxu1 %v3013_v36  ;;  %v2584_v39 = vpop.eup %2583 }
 0x4d4   : > { %2439 = vmatmul.mubr.f32.gmra.mxu1 %v3017_v38  ;;  %v2217_v42 = vadd.f32 -1.0, %v2584_v39  ;;  %v3025_v45 = vsel %vm1452_vm9, %v2991_v7, %v2218_v40 }
 0x4d5   : > { %v2586_v41 = vpop.eup %2585 }
 0x4d6   : > { %v3021_v43 = vsel %vm1451_vm8, %v1422_v13, %v2217_v42  ;;  %v2220_v49 = vadd.f32 -1.0, %v2586_v41 }
 0x4d7   : > { %v2588_v28 = vpop.eup %2587  ;;  %2441 = vmatprep.mubr.f32.mxu1 %v3021_v43 }
 0x4d8   : > { %v2219_v47 = vadd.f32 -1.0, %v2588_v28  ;;  %2442 = vmatmul.mubr.f32.gmra.mxu1 %v3025_v45  ;;  %v3033_v55 = vsel %vm1454_vm11, %v2994_v17, %v2220_v49 }
 0x4d9   : > { %v2590_v53 = vpop.eup %2589 }
 0x4da   : > { %v3028_v37 = vsel %vm1453_vm10, %v1432_v20, %v2219_v47  ;;  %v2222_v57 = vadd.f32 -1.0, %v2590_v53 }
 0x4db   : > { %v2592_v51 = vpop.eup %2591  ;;  %2444 = vmatprep.mubr.f32.mxu1 %v3028_v37 }
 0x4dc   : > { %v2221_v56 = vadd.f32 -1.0, %v2592_v51  ;;  %2445 = vmatmul.mubr.f32.gmra.mxu1 %v3033_v55  ;;  %v3041_v59 = vsel %vm1456_vm13, %v2997_v9, %v2222_v57 }
 0x4de   : > { %v3036_v58 = vsel %vm1455_vm12, %v1442_v29, %v2221_v56 }
 0x4df   : > { %2447 = vmatprep.mubr.f32.mxu1 %v3036_v58 }
 0x4e0   : > { %2448 = vmatmul.mubr.f32.gmra.mxu1 %v3041_v59 }
 0x588   : > { %v2434_v61 = vpop.f32.mrf.mxu1 }
 0x589   : > { %v1582_v62 = vadd.f32 %v2434_v61, %v2223_v60  ;;  %v1691_v61 = vld [vmem:[%s562_s20 + $0x8] sm:$0xff] }
 0x58a   : > { %v1576_v63 = vpop.f32.mrf.mxu1 }
 0x58b   : > { %2593 = vtanh.f32 %v1582_v62  ;;  %v1577_v0 = vadd.f32 %v2223_v60, %v1576_v63  ;;  %v1692_v63 = vld [vmem:[%s562_s20 + $0x10] sm:$0xff] }
 0x58d   : > { %2595 = vtanh.f32 %v1577_v0 }
 0x590   : > { %v2437_v1 = vpop.f32.mrf.mxu1 }
 0x591   : > { %v1592_v2 = vadd.f32 %v2437_v1, %v2223_v60 }
 0x592   : > { %v1586_v3 = vpop.f32.mrf.mxu1 }
 0x593   : > { %2597 = vtanh.f32 %v1592_v2  ;;  %v1587_v4 = vadd.f32 %v2223_v60, %v1586_v3 }
 0x594   : > { %v2440_v7 = vpop.f32.mrf.mxu1 }
 0x595   : > { %2599 = vtanh.f32 %v1587_v4  ;;  %v1602_v9 = vadd.f32 %v2440_v7, %v2223_v60 }
 0x596   : > { %v1596_v8 = vpop.f32.mrf.mxu1 }
 0x597   : > { %v1597_v17 = vadd.f32 %v2223_v60, %v1596_v8  ;;  %v1693_v8 = vld [vmem:[%s562_s20 + $0x18] sm:$0xff] }
 0x598   : > { %v2594_v12 = vpop.eup %2593  ;;  %v2443_v13 = vpop.f32.mrf.mxu1 }
 0x599   : > { %v1612_v14 = vadd.f32 %v2443_v13, %v2223_v60  ;;  %v1655_v15 = vmul.f32 %v2594_v12, %v2224_v11 }
 0x59a   : > { %v2596_v16 = vpop.eup %2595  ;;  %v1606_v5 = vpop.f32.mrf.mxu1 }
 0x59b   : > { %2601 = vtanh.f32 %v1612_v14  ;;  %v1607_v6 = vadd.f32 %v2223_v60, %v1606_v5  ;;  %1668 = vadd.xlane.f32.xlu0 %v1655_v15  ;;  %v1654_v18 = vmul.f32 %v2596_v16, %v2224_v11  ;;  %v1694_v5 = vld [vmem:[%s562_s20 + $0x20] sm:$0xff] }
 0x59c   : > { %v2446_v20 = vpop.f32.mrf.mxu1 }
 0x59d   : > { %2603 = vtanh.f32 %v1607_v6  ;;  %v1622_v21 = vadd.f32 %v2446_v20, %v2223_v60  ;;  %1666 = vadd.xlane.f32.xlu1 %v1654_v18 }
 0x59e   : > { %2605 = vtanh.f32 %v1597_v17  ;;  %v1616_v22 = vpop.f32.mrf.mxu1 }
 0x59f   : > { %2607 = vtanh.f32 %v1622_v21  ;;  %v1617_v25 = vadd.f32 %v2223_v60, %v1616_v22 }
 0x5a0   : > { %v2598_v23 = vpop.eup %2597  ;;  %v2449_v27 = vpop.f32.mrf.mxu1 }
 0x5a1   : > { %v1657_v52 = vmul.f32 %v2598_v23, %v2224_v11  ;;  %2609 = vtanh.f32 %v1617_v25  ;;  %v1632_v24 = vadd.f32 %v2449_v27, %v2223_v60  ;;  %v1695_v25 = vld [vmem:[%s562_s20 + $0x28] sm:$0xff] }
 0x5a2   : > { %v2600_v29 = vpop.eup %2599  ;;  %v1626_v50 = vpop.f32.mrf.mxu1  ;;  %2611 = vtanh.f32 %v1602_v9 }
 0x5a3   : > { %1672 = vadd.xlane.f32.xlu1 %v1657_v52  ;;  %v1627_v30 = vadd.f32 %v2223_v60, %v1626_v50  ;;  %v1656_v48 = vmul.f32 %v2600_v29, %v2224_v11  ;;  %v1690_v60 = vld [vmem:[%s562_s20] sm:$0xff] }
 0x5a5   : > { %2613 = vtanh.f32 %v1627_v30 }
 0x5a6   : > { %2615 = vtanh.f32 %v1632_v24 }
 0x5a7   : > { %1670 = vadd.xlane.f32.xlu1 %v1656_v48 }
 0x5a8   : > { %v2602_v26 = vpop.eup %2601 }
 0x5a9   : > { %v1661_v46 = vmul.f32 %v2602_v26, %v2224_v11 }
 0x5aa   : > { %v2604_v31 = vpop.eup %2603 }
 0x5ab   : > { %v2606_v44 = vpop.eup %2605  ;;  %1680 = vadd.xlane.f32.xlu0 %v1661_v46  ;;  %v1660_v33 = vmul.f32 %v2604_v31, %v2224_v11 }
 0x5ac   : > { %v2608_v34 = vpop.eup %2607  ;;  %v1658_v40 = vmul.f32 %v2606_v44, %v2224_v11 }
 0x5ad   : > { %1678 = vadd.xlane.f32.xlu1 %v1660_v33  ;;  %v1663_v35 = vmul.f32 %v2608_v34, %v2224_v11 }
 0x5ae   : > { %v2610_v39 = vpop.eup %2609 }
 0x5af   : > { %1684 = vadd.xlane.f32.xlu0 %v1663_v35  ;;  %v2612_v41 = vpop.eup %2611  ;;  %v1662_v42 = vmul.f32 %v2610_v39, %v2224_v11 }
 0x5b0   : > { %v1659_v47 = vmul.f32 %v2612_v41, %v2224_v11 }
 0x5b1   : > { %1674 = vadd.xlane.f32.xlu1 %v1658_v40 }
 0x5b2   : > { %v2614_v28 = vpop.eup %2613 }
 0x5b3   : > { %1682 = vadd.xlane.f32.xlu0 %v1662_v42  ;;  %v1664_v49 = vmul.f32 %v2614_v28, %v2224_v11  ;;  %v2616_v53 = vpop.eup %2615 }
 0x5b4   : > { %v1665_v51 = vmul.f32 %v2616_v53, %v2224_v11 }
 0x5b5   : > { %1676 = vadd.xlane.f32.xlu1 %v1659_v47 }
 0x5b7   : > { %1686 = vadd.xlane.f32.xlu0 %v1664_v49 }
 0x5bb   : > { %1688 = vadd.xlane.f32.xlu0 %v1665_v51 }
 0x624   : > { %v1669_v62 = vpop.xlane.xlu0 %1668 }
 0x625   : > { %v1697_v2 = vmul.f32 %v1691_v61, %v1669_v62  ;;  %v1791_v62 = vld [vmem:[%s3073_s26 + $0x58] sm:$0xff] }
 0x626   : > { %v1667_v56 = vpop.xlane.xlu1 %1666 }
 0x627   : > { %v1696_v1 = vmul.f32 %v1690_v60, %v1667_v56  ;;  %v1704_v12 = vsel %vm1702_vm14, %v1697_v2, 0.0  ;;  %v1795_v56 = vld [vmem:[%s3073_s26 + $0x78] sm:$0xff] }
 0x628   : > { %2450 = vmatprep.subr.mxu0 %v1795_v56  ;;  %v1787_v2 = vld [vmem:[%s3073_s26 + $0x38] sm:$0xff] }
 0x629   : > { %v1703_v7 = vsel %vm1702_vm14, %v1696_v1, 0.0  ;;  %2451 = vmatpush3.msra.mxu0 %v1795_v56  ;;  %v1788_v1 = vld [vmem:[%s3073_s26 + $0x40] sm:$0xff] }
 0x62a   : > { %v1705_v15 = vadd.f32 %v1704_v12, %v1703_v7  ;;  %v1784_v7 = vld [vmem:[%s3073_s26 + $0x20] sm:$0xff]  ;;  %v1781_v12 = vld [vmem:[%s3073_s26 + $0x8] sm:$0xff] }
 0x62c   : > { %v1673_v57 = vpop.xlane.xlu1 %1672 }
 0x62d   : > { %v1699_v16 = vmul.f32 %v1693_v8, %v1673_v57  ;;  %v1794_v57 = vld [vmem:[%s3073_s26 + $0x70] sm:$0xff] }
 0x62e   : > { %2452 = vmatprep.subr.mxu0 %v1794_v57 }
 0x62f   : > { %v1708_v23 = vsel %vm1702_vm14, %v1699_v16, 0.0  ;;  %2453 = vmatpush3.msra.mxu0 %v1794_v57 }
 0x630   : > { %v1671_v0 = vpop.xlane.xlu1 %1670 }
 0x631   : > { %v1698_v3 = vmul.f32 %v1692_v63, %v1671_v0  ;;  %v1789_v0 = vld [vmem:[%s3073_s26 + $0x48] sm:$0xff] }
 0x633   : > { %v1706_v13 = vsel %vm1702_vm14, %v1698_v3, 0.0  ;;  %v1786_v3 = vld [vmem:[%s3073_s26 + $0x30] sm:$0xff] }
 0x634   : > { %v1681_v4 = vpop.xlane.xlu0 %1680  ;;  %v1707_v18 = vadd.f32 %v1706_v13, %v1705_v15  ;;  %v1780_v13 = vld [vmem:[%s3073_s26] sm:$0xff] }
 0x635   : > { %v1725_v6 = vmul.f32 %v1691_v61, %v1681_v4  ;;  %v1792_v61 = vld [vmem:[%s3073_s26 + $0x60] sm:$0xff]  ;;  %v1785_v4 = vld [vmem:[%s3073_s26 + $0x28] sm:$0xff] }
 0x636   : > { %v1679_v11 = vpop.xlane.xlu1 %1678  ;;  %v1709_v24 = vadd.f32 %v1708_v23, %v1707_v18 }
 0x637   : > { %v1724_v14 = vmul.f32 %v1690_v60, %v1679_v11  ;;  %v1731_v27 = vsel %vm1702_vm14, %v1725_v6, 0.0  ;;  %v1793_v60 = vld [vmem:[%s3073_s26 + $0x68] sm:$0xff]  ;;  %v1782_v11 = vld [vmem:[%s3073_s26 + $0x10] sm:$0xff] }
 0x638   : > { %v1685_v17 = vpop.xlane.xlu0 %1684  ;;  %2454 = vmatprep.subr.mxu0 %v1793_v60 }
 0x639   : > { %v1730_v21 = vsel %vm1702_vm14, %v1724_v14, 0.0  ;;  %v1727_v52 = vmul.f32 %v1693_v8, %v1685_v17  ;;  %2455 = vmatpush3.msra.mxu0 %v1793_v60  ;;  %v1783_v8 = vld [vmem:[%s3073_s26 + $0x18] sm:$0xff] }
 0x63a   : > { %v1675_v20 = vpop.xlane.xlu1 %1674  ;;  %v1732_v30 = vadd.f32 %v1731_v27, %v1730_v21  ;;  %2456 = vmatprep.subr.mxu0 %v1792_v61 }
 0x63b   : > { %v1700_v22 = vmul.f32 %v1694_v5, %v1675_v20  ;;  %v1735_v34 = vsel %vm1702_vm14, %v1727_v52, 0.0  ;;  %2457 = vmatpush3.msra.mxu0 %v1792_v61 }
 0x63c   : > { %v1683_v9 = vpop.xlane.xlu0 %1682  ;;  %2458 = vmatprep.subr.mxu0 %v1791_v62 }
 0x63d   : > { %v1710_v29 = vsel %vm1702_vm14, %v1700_v22, 0.0  ;;  %v1726_v50 = vmul.f32 %v1692_v63, %v1683_v9  ;;  %2459 = vmatpush3.msra.mxu0 %v1791_v62  ;;  %v1790_v63 = vld [vmem:[%s3073_s26 + $0x50] sm:$0xff] }
 0x63e   : > { %v1677_v48 = vpop.xlane.xlu1 %1676  ;;  %v1711_v33 = vadd.f32 %v1710_v29, %v1709_v24  ;;  %2460 = vmatprep.subr.mxu0 %v1790_v63 }
 0x63f   : > { %v1733_v26 = vsel %vm1702_vm14, %v1726_v50, 0.0  ;;  %v1701_v46 = vmul.f32 %v1695_v25, %v1677_v48  ;;  %2461 = vmatpush3.msra.mxu0 %v1790_v63 }
 0x640   : > { %v1734_v31 = vadd.f32 %v1733_v26, %v1732_v30  ;;  %v1687_v44 = vpop.xlane.xlu0 %1686  ;;  %2462 = vmatprep.subr.mxu0 %v1789_v0 }
 0x641   : > { %v1728_v35 = vmul.f32 %v1694_v5, %v1687_v44  ;;  %v1712_v39 = vsel %vm1702_vm14, %v1701_v46, 0.0  ;;  %2463 = vmatpush3.msra.mxu0 %v1789_v0 }
 0x642   : > { %v1713_v40 = vadd.f32 %v1712_v39, %v1711_v33  ;;  %v1736_v41 = vadd.f32 %v1735_v34, %v1734_v31  ;;  %2464 = vmatprep.subr.mxu0 %v1788_v1 }
 0x643   : > { %v1737_v42 = vsel %vm1702_vm14, %v1728_v35, 0.0  ;;  %2465 = vmatpush3.msra.mxu0 %v1788_v1 }
 0x644   : > { %1714 = vadd.xlane.f32.xlu1 %v1713_v40  ;;  %v1689_v28 = vpop.xlane.xlu0 %1688  ;;  %v1738_v49 = vadd.f32 %v1737_v42, %v1736_v41  ;;  %2466 = vmatprep.subr.mxu0 %v1787_v2 }
 0x645   : > { %v1729_v47 = vmul.f32 %v1695_v25, %v1689_v28  ;;  %2467 = vmatpush3.msra.mxu0 %v1787_v2 }
 0x646   : > { %2468 = vmatprep.subr.mxu0 %v1786_v3 }
 0x647   : > { %v1739_v53 = vsel %vm1702_vm14, %v1729_v47, 0.0  ;;  %2469 = vmatpush3.msra.mxu0 %v1786_v3 }
 0x648   : > { %v1740_v51 = vadd.f32 %v1739_v53, %v1738_v49  ;;  %2470 = vmatprep.subr.mxu0 %v1785_v4 }
 0x649   : > { %2471 = vmatpush3.msra.mxu0 %v1785_v4 }
 0x64a   : > { %1741 = vadd.xlane.f32.xlu0 %v1740_v51  ;;  %2472 = vmatprep.subr.mxu0 %v1784_v7 }
 0x64b   : > { %2473 = vmatpush3.msra.mxu0 %v1784_v7 }
 0x64c   : > { %2474 = vmatprep.subr.mxu0 %v1783_v8 }
 0x64d   : > { %2475 = vmatpush3.msra.mxu0 %v1783_v8 }
 0x64e   : > { %2476 = vmatprep.subr.mxu0 %v1782_v11 }
 0x64f   : > { %2477 = vmatpush3.msra.mxu0 %v1782_v11 }
 0x650   : > { %2478 = vmatprep.subr.mxu0 %v1781_v12 }
 0x651   : > { %2479 = vmatpush3.msra.mxu0 %v1781_v12 }
 0x652   : > { %2480 = vmatprep.subr.mxu0 %v1780_v13 }
 0x653   : > { %2481 = vmatpush3.msra.mxu0 %v1780_v13 }
 0x6cd   : > { %v1715_v14 = vpop.xlane.xlu1 %1714 }
 0x6ce   : > { %v1716_v15 = vrot.slane %v1715_v14, 4 }
 0x6d0   : > { %v1717_v16 = vadd.f32 %v1716_v15, %v1715_v14 }
 0x6d2   : > { %v1718_v17 = vrot.slane %v1717_v16, 2 }
 0x6d3   : > { %v1742_v5 = vpop.xlane.xlu0 %1741 }
 0x6d4   : > { %v1743_v6 = vrot.slane %v1742_v5, 4  ;;  %v1719_v18 = vadd.f32 %v1718_v17, %v1717_v16 }
 0x6d6   : > { %v1744_v20 = vadd.f32 %v1743_v6, %v1742_v5  ;;  %v1720_v21 = vrot.slane %v1719_v18, 1 }
 0x6d8   : > { %v1745_v22 = vrot.slane %v1744_v20, 2  ;;  %v1721_v23 = vadd.f32 %v1720_v21, %v1719_v18 }
 0x6da   : > { %2493 = vpush %v1721_v23  ;;  %v1746_v9 = vadd.f32 %v1745_v22, %v1744_v20 }
 0x6dc   : > { %v1747_v25 = vrot.slane %v1746_v9, 1 }
 0x6de   : > { %v1748_v27 = vadd.f32 %v1747_v25, %v1746_v9 }
 0x6e0   : > { %2495 = vpush %v1748_v27 }
 0x70b   : > { %s2494_s25 = spop %2493 }
 0x70c   : > { %v1723_v52 = vstv %s2494_s25 }
 0x711   : > { %s2496_s27 = spop %2495 }
 0x712   : > { %v1750_v29 = vstv %s2496_s27 }
 0x713   : > { %v1751_v50 = vmax.f32 %v1723_v52, %v1750_v29 }
 0x715   : > { %v1752_v30 = vsub.f32 %v1723_v52, %v1751_v50  ;;  %v1755_v48 = vsub.f32 %v1750_v29, %v1751_v50 }
 0x717   : > { %v1753_v24 = vmul.f32 1.442695, %v1752_v30  ;;  %v1756_v26 = vmul.f32 1.442695, %v1755_v48 }
 0x719   : > { %2617 = vpow2.f32 %v1753_v24 }
 0x71a   : > { %2619 = vpow2.f32 %v1756_v26 }
 0x726   : > { %v2618_v46 = vpop.eup %2617 }
 0x727   : > { %v2620_v31 = vpop.eup %2619 }
 0x728   : > { %v1758_v44 = vadd.f32 %v2620_v31, %v2618_v46 }
 0x72a   : > { %2621 = vrcp.f32 %v1758_v44 }
 0x737   : > { %v2622_v33 = vpop.eup %2621 }
 0x738   : > { %v1760_v34 = vmul.f32 %v2622_v33, %v2618_v46  ;;  %v1767_v35 = vmul.f32 %v2622_v33, %v2620_v31 }
 0x73a   : > { %v1761_v39 = vmul.f32 %v1760_v34, %v2999_v10  ;;  %v1768_v40 = vmul.f32 %v1767_v35, %v3021_v43  ;;  %v1762_v41 = vmul.f32 %v1760_v34, %v3001_v54  ;;  %v1769_v42 = vmul.f32 %v1767_v35, %v3025_v45 }
 0x73b   : > { %v1763_v28 = vmul.f32 %v1760_v34, %v3006_v32  ;;  %v1770_v47 = vmul.f32 %v1767_v35, %v3028_v37  ;;  %v1764_v51 = vmul.f32 %v1760_v34, %v3009_v19  ;;  %v1771_v56 = vmul.f32 %v1767_v35, %v3033_v55  ;;  %v2225_v55 = vld [vmem:[%s570_s30] ss:$0 sm:$0xff] }
 0x73c   : > { %v1774_v49 = vadd.f32 %v1768_v40, %v1761_v39  ;;  %v1775_v53 = vadd.f32 %v1769_v42, %v1762_v41  ;;  %v1765_v10 = vmul.f32 %v1760_v34, %v3013_v36  ;;  %v1772_v43 = vmul.f32 %v1767_v35, %v3036_v58 }
 0x73d   : > { %v1776_v57 = vadd.f32 %v1770_v47, %v1763_v28  ;;  %v1777_v54 = vadd.f32 %v1771_v56, %v1764_v51  ;;  %v1766_v32 = vmul.f32 %v1760_v34, %v3017_v38  ;;  %v1773_v45 = vmul.f32 %v1767_v35, %v3041_v59 }
 0x73e   : > { %2482 = vmatprep.mubr.f32.mxu0 %v1774_v49  ;;  %v1778_v37 = vadd.f32 %v1772_v43, %v1765_v10 }
 0x73f   : > { %2483 = vmatmul.mubr.f32.vlgmr.msra.gmra.mxu0 %v1775_v53  ;;  %v1779_v19 = vadd.f32 %v1773_v45, %v1766_v32 }
 0x740   : > { %2485 = vmatprep.mubr.f32.mxu0 %v1776_v57 }
 0x743   : > { %2486 = vmatmul.mubr.f32.gmra.mxu0 %v1777_v54 }
 0x744   : > { %2488 = vmatprep.mubr.f32.mxu0 %v1778_v37 }
 0x747   : > { %2489 = vmatmul.mubr.f32.gmra.mxu0 %v1779_v19 }
 0x7ff   : > { %v2484_v36 = vpop.f32.mrf.mxu0 }
 0x800   : > { %v1875_v60 = vadd.f32 %v2484_v36, %v2225_v55 }
 0x801   : > { %v1869_v58 = vpop.f32.mrf.mxu0 }
 0x802   : > { %v1899_v61 = vmax.f32 %v1875_v60, 0.0  ;;  %v1870_v62 = vadd.f32 %v2225_v55, %v1869_v58 }
 0x803   : > { %v2487_v63 = vpop.f32.mrf.mxu0 }
 0x804   : > { %v1898_v38 = vmax.f32 %v1870_v62, 0.0  ;;  %v1885_v0 = vadd.f32 %v2487_v63, %v2225_v55  ;;  %v1908_v59 = vsel %vm1904_vm15, %v1899_v61, 0.0 }
 0x805   : > { %1909 = vadd.xlane.f32.xlu0 %v1908_v59  ;;  %v1879_v1 = vpop.f32.mrf.mxu0 }
 0x806   : > { %v1901_v2 = vmax.f32 %v1885_v0, 0.0  ;;  %v1880_v3 = vadd.f32 %v2225_v55, %v1879_v1  ;;  %v1905_v4 = vsel %vm1904_vm15, %v1898_v38, 0.0  ;;  %v2226_v1 = vld [vmem:[%s3148_s10] ss:$0 sm:$0xff] }
 0x807   : > { %v2490_v7 = vpop.f32.mrf.mxu0  ;;  %1906 = vadd.xlane.f32.xlu1 %v1905_v4  ;;  %v2227_v4 = vld [vmem:[%s3149_s11] ss:$0 sm:$0xff] }
 0x808   : > { %v1900_v8 = vmax.f32 %v1880_v3, 0.0  ;;  %v1895_v11 = vadd.f32 %v2490_v7, %v2225_v55  ;;  %v1914_v12 = vsel %vm1904_vm15, %v1901_v2, 0.0 }
 0x809   : > { %1915 = vadd.xlane.f32.xlu0 %v1914_v12  ;;  %v1889_v13 = vpop.f32.mrf.mxu0 }
 0x80a   : > { %v1903_v14 = vmax.f32 %v1895_v11, 0.0  ;;  %v1890_v15 = vadd.f32 %v2225_v55, %v1889_v13  ;;  %v1911_v16 = vsel %vm1904_vm15, %v1900_v8, 0.0 }
 0x80b   : > { %1912 = vadd.xlane.f32.xlu1 %v1911_v16 }
 0x80c   : > { %v1902_v17 = vmax.f32 %v1890_v15, 0.0  ;;  %v1920_v5 = vsel %vm1904_vm15, %v1903_v14, 0.0 }
 0x80d   : > { %1921 = vadd.xlane.f32.xlu0 %v1920_v5 }
 0x80e   : > { %v1917_v6 = vsel %vm1904_vm15, %v1902_v17, 0.0 }
 0x80f   : > { %1918 = vadd.xlane.f32.xlu1 %v1917_v6 }
 0x88e   : > { %v1910_v18 = vpop.xlane.xlu0 %1909 }
 0x88f   : > { %v1925_v20 = vmul.f32 0.03125, %v1910_v18 }
 0x890   : > { %v1907_v21 = vpop.xlane.xlu1 %1906 }
 0x891   : > { %v1931_v22 = vsub.f32 %v1899_v61, %v1925_v20  ;;  %v1924_v23 = vmul.f32 0.03125, %v1907_v21 }
 0x892   : > { %v1916_v9 = vpop.xlane.xlu0 %1915 }
 0x893   : > { %v1930_v25 = vsub.f32 %v1898_v38, %v1924_v23  ;;  %v1927_v27 = vmul.f32 0.03125, %v1916_v9  ;;  %v1937_v52 = vmul.f32 %v1931_v22, %v1931_v22 }
 0x894   : > { %v1913_v29 = vpop.xlane.xlu1 %1912 }
 0x895   : > { %v1933_v50 = vsub.f32 %v1901_v2, %v1927_v27  ;;  %v1926_v30 = vmul.f32 0.03125, %v1913_v29  ;;  %v1945_v48 = vsel %vm1904_vm15, %v1937_v52, 0.0  ;;  %v1936_v24 = vmul.f32 %v1930_v25, %v1930_v25 }
 0x896   : > { %1946 = vadd.xlane.f32.xlu0 %v1945_v48  ;;  %v1922_v26 = vpop.xlane.xlu0 %1921 }
 0x897   : > { %v1932_v46 = vsub.f32 %v1900_v8, %v1926_v30  ;;  %v1929_v31 = vmul.f32 0.03125, %v1922_v26  ;;  %v1942_v44 = vsel %vm1904_vm15, %v1936_v24, 0.0  ;;  %v1939_v33 = vmul.f32 %v1933_v50, %v1933_v50 }
 0x898   : > { %1943 = vadd.xlane.f32.xlu1 %v1942_v44  ;;  %v1919_v34 = vpop.xlane.xlu1 %1918 }
 0x899   : > { %v1935_v35 = vsub.f32 %v1903_v14, %v1929_v31  ;;  %v1928_v39 = vmul.f32 0.03125, %v1919_v34  ;;  %v1951_v40 = vsel %vm1904_vm15, %v1939_v33, 0.0  ;;  %v1938_v41 = vmul.f32 %v1932_v46, %v1932_v46 }
 0x89a   : > { %1952 = vadd.xlane.f32.xlu0 %v1951_v40 }
 0x89b   : > { %v1934_v42 = vsub.f32 %v1902_v17, %v1928_v39  ;;  %v1948_v28 = vsel %vm1904_vm15, %v1938_v41, 0.0  ;;  %v1941_v47 = vmul.f32 %v1935_v35, %v1935_v35 }
 0x89c   : > { %1949 = vadd.xlane.f32.xlu1 %v1948_v28 }
 0x89d   : > { %v1957_v49 = vsel %vm1904_vm15, %v1941_v47, 0.0  ;;  %v1940_v53 = vmul.f32 %v1934_v42, %v1934_v42 }
 0x89e   : > { %1958 = vadd.xlane.f32.xlu0 %v1957_v49 }
 0x89f   : > { %v1954_v51 = vsel %vm1904_vm15, %v1940_v53, 0.0 }
 0x8a0   : > { %1955 = vadd.xlane.f32.xlu1 %v1954_v51 }
 0x91f   : > { %v1947_v56 = vpop.xlane.xlu0 %1946 }
 0x920   : > { %v1961_v57 = vmul.f32 0.03125, %v1947_v56 }
 0x921   : > { %v1944_v10 = vpop.xlane.xlu1 %1943 }
 0x922   : > { %v1967_v43 = vadd.f32 1e-05, %v1961_v57  ;;  %v1960_v54 = vmul.f32 0.03125, %v1944_v10 }
 0x923   : > { %v1953_v32 = vpop.xlane.xlu0 %1952 }
 0x924   : > { %2623 = vrsqrt.f32 %v1967_v43  ;;  %v1966_v45 = vadd.f32 1e-05, %v1960_v54  ;;  %v1963_v37 = vmul.f32 0.03125, %v1953_v32 }
 0x925   : > { %v1950_v19 = vpop.xlane.xlu1 %1949 }
 0x926   : > { %2625 = vrsqrt.f32 %v1966_v45  ;;  %v1969_v55 = vadd.f32 1e-05, %v1963_v37  ;;  %v1962_v36 = vmul.f32 0.03125, %v1950_v19 }
 0x927   : > { %v1959_v60 = vpop.xlane.xlu0 %1958 }
 0x928   : > { %2627 = vrsqrt.f32 %v1969_v55  ;;  %v1968_v58 = vadd.f32 1e-05, %v1962_v36  ;;  %v1965_v61 = vmul.f32 0.03125, %v1959_v60 }
 0x929   : > { %v1956_v62 = vpop.xlane.xlu1 %1955 }
 0x92a   : > { %2629 = vrsqrt.f32 %v1968_v58  ;;  %v1971_v63 = vadd.f32 1e-05, %v1965_v61  ;;  %v1964_v38 = vmul.f32 0.03125, %v1956_v62 }
 0x92c   : > { %2631 = vrsqrt.f32 %v1971_v63  ;;  %v1970_v0 = vadd.f32 1e-05, %v1964_v38 }
 0x92e   : > { %2633 = vrsqrt.f32 %v1970_v0 }
 0x931   : > { %v2624_v59 = vpop.eup %2623 }
 0x932   : > { %v1979_v2 = vmul.f32 %v2624_v59, %v1931_v22 }
 0x933   : > { %v2626_v3 = vpop.eup %2625 }
 0x934   : > { %v1992_v7 = vmul.f32 %v2226_v1, %v1979_v2  ;;  %v1978_v8 = vmul.f32 %v2626_v3, %v1930_v25 }
 0x935   : > { %v2628_v11 = vpop.eup %2627 }
 0x936   : > { %v2005_v12 = vadd.f32 %v2227_v4, %v1992_v7  ;;  %v1991_v13 = vmul.f32 %v2226_v1, %v1978_v8  ;;  %v1981_v14 = vmul.f32 %v2628_v11, %v1933_v50 }
 0x937   : > { %v2630_v15 = vpop.eup %2629 }
 0x938   : > { %2011 = vst.msk [vmem:[%s575_s19 + $0x8] sm:$0xff] %vm1904_vm15, %v2005_v12  ;;  %v2004_v16 = vadd.f32 %v2227_v4, %v1991_v13  ;;  %v1994_v17 = vmul.f32 %v2226_v1, %v1981_v14  ;;  %v1980_v5 = vmul.f32 %v2630_v15, %v1932_v46 }
 0x939   : > { %v2632_v6 = vpop.eup %2631 }
 0x93a   : > { %2010 = vst.msk [vmem:[%s575_s19] sm:$0xff] %vm1904_vm15, %v2004_v16  ;;  %v2007_v18 = vadd.f32 %v2227_v4, %v1994_v17  ;;  %v1993_v20 = vmul.f32 %v2226_v1, %v1980_v5  ;;  %v1983_v21 = vmul.f32 %v2632_v6, %v1935_v35 }
 0x93b   : > { %v2634_v22 = vpop.eup %2633 }
 0x93c   : > { %2013 = vst.msk [vmem:[%s575_s19 + $0x18] sm:$0xff] %vm1904_vm15, %v2007_v18  ;;  %v2006_v23 = vadd.f32 %v2227_v4, %v1993_v20  ;;  %v1996_v9 = vmul.f32 %v2226_v1, %v1983_v21  ;;  %v1982_v25 = vmul.f32 %v2634_v22, %v1934_v42 }
 0x93e   : > { %2012 = vst.msk [vmem:[%s575_s19 + $0x10] sm:$0xff] %vm1904_vm15, %v2006_v23  ;;  %v2009_v27 = vadd.f32 %v2227_v4, %v1996_v9  ;;  %v1995_v52 = vmul.f32 %v2226_v1, %v1982_v25 }
 0x940   : > { %2015 = vst.msk [vmem:[%s575_s19 + $0x28] sm:$0xff] %vm1904_vm15, %v2009_v27  ;;  %v2008_v29 = vadd.f32 %v2227_v4, %v1995_v52 }
 0x942   : > { %2014 = vst.msk [vmem:[%s575_s19 + $0x20] sm:$0xff] %vm1904_vm15, %v2008_v29 }
 0x943 PF: > { %s22_s21 = sadd.s32 1, %s2641_s21  }
 0x944   : > { %p19_p4 = scmp.ge.s32.totalorder %s22_s21, 4  }
 0x946   :  { %21 = sbr.rel (!%p19_p4) target bundleno = 1 (0x1), region = 126 }

</bundles_post_ra>
